<compile_context>
chip_gen: v6e
topology: v6e:2x2x1
jax: 0.10.0
libtpu: 0.0.40
codegen_flags: <defaults>
</compile_context>

<pallas_src>
import numpy as np
import jax
import jax.numpy as jnp
from jax import lax
from jax.experimental import pallas as pl
from jax.experimental.pallas import tpu as pltpu


# ----------------------------- parameter setup (glue) -----------------------------

def make_sketch_matrix(key, input_dim, output_dim):
    """Dense count-sketch matrix [input_dim, output_dim]: M[j, h[j]] = s[j] in {+1,-1}."""
    kh, ks = jax.random.split(key)
    rand_h = jax.random.randint(kh, (input_dim,), 0, output_dim)
    rand_s = (2 * jax.random.randint(ks, (input_dim,), 0, 2) - 1).astype(jnp.float32)
    m = jnp.zeros((input_dim, output_dim), jnp.float32)
    m = m.at[jnp.arange(input_dim), rand_h].add(rand_s)
    return m


def make_dft_matrices(d):
    """Forward-DFT real/imag matrices for signal length d (both symmetric)."""
    n = np.arange(d)
    ang = 2.0 * np.pi * np.outer(n, n) / d
    fr = np.cos(ang).astype(np.float32)        # Re part of forward DFT
    fi = (-np.sin(ang)).astype(np.float32)     # Im part of forward DFT
    return jnp.asarray(fr), jnp.asarray(fi)


def fold_constants(sk1, sk2, output_dim, w_dtype):
    """Fold count-sketch + forward DFT into per-input weights and build the inverse.

      W1   = SK1 @ [FR | FI]        : [C1, 2D]
      W2   = SK2 @ [FR | FI]        : [C2, 2D]
      Winv = [FR ; FI] / D          : [2D, D]    real(ifft(p)) == (pr @ FR + pi @ FI)/D
    """
    d = output_dim
    fr, fi = make_dft_matrices(d)
    fwd = jnp.concatenate([fr, fi], axis=1)                             # [D, 2D]
    w1 = (sk1 @ fwd).astype(w_dtype)                                    # [C1, 2D]
    w2 = (sk2 @ fwd).astype(w_dtype)                                    # [C2, 2D]
    winv = (jnp.concatenate([fr, fi], axis=0) / d).astype(jnp.float32)  # [2D, D]
    return w1, w2, winv


# --------------------------------- Pallas kernels ----------------------------------

def cbp_gram_kernel(x1_ref, x2_ref, w1_ref, w2_ref, winv_ref, o_ref, acc_ref):
    """Small-channel form: HW rides the MXU contraction axis (review #6).

    x1_ref: [TB, C1, HWp] bf16   x2_ref: [TB, C2, HWp] bf16
    w1_ref: [C1, 2D] f32         w2_ref: [C2, 2D] f32        winv_ref: [2D, D] f32
    o_ref : [TB, D] f32          acc_ref: [TB, 2D] f32 VMEM scratch
    """
    tb, d = o_ref.shape
    w1 = w1_ref[...]
    w1r, w1i = w1[:, :d], w1[:, d:]          # D is a lane-tile multiple -> free split
    w2 = w2_ref[...]
    # Contract the HW (last) axis of both operands: G = x1 @ x2^T with K = HWp.
    gram_dims = (((1,), (1,)), ((), ()))

    for t in range(tb):                      # TB is small and static (unrolled)
        g = lax.dot_general(x1_ref[t], x2_ref[t], gram_dims,
                            preferred_element_type=jnp.float32)          # [C1, C2]
        t12 = jnp.dot(g, w2, preferred_element_type=jnp.float32)         # [C1, 2D]
        tr, ti = t12[:, :d], t12[:, d:]
        # Frequency-domain product already sum-pooled over HW; only C1 x D elementwise
        # work remains (vs HW x 2D in the direct form), then a cheap sublane reduce.
        pr = jnp.sum(w1r * tr - w1i * ti, axis=0, keepdims=True)         # [1, D]
        pi = jnp.sum(w1r * ti + w1i * tr, axis=0, keepdims=True)         # [1, D]
        acc_ref[pl.ds(t, 1), pl.ds(0, d)] = pr
        acc_ref[pl.ds(t, 1), pl.ds(d, d)] = pi

    # One batched inverse-DFT matmul + one unmasked lane-dense block store per grid step.
    o_ref[...] = jnp.dot(acc_ref[...], winv_ref[...],
                         preferred_element_type=jnp.float32).astype(o_ref.dtype)


def cbp_direct_kernel(x1_ref, x2_ref, w1_ref, w2_ref, winv_ref, o_ref, acc_ref):
    """Large-channel form: fused sketch+DFT matmuls with K = C (kept per review #6).

    x1_ref: [TB, C1, HWp] bf16   w1_ref: [C1, 2D] bf16 (MXU operands)
    o_ref : [TB, D] f32          acc_ref: [TB, 2D] f32 VMEM scratch
    """
    tb, d = o_ref.shape
    w1 = w1_ref[...]
    w2 = w2_ref[...]
    # Transposed-LHS matmul (contract channel dim 0 of x with dim 0 of W).  This exact
    # lowering compiled/ran clean previously; for C >= 128 double-check with
    # pl.lower_as_mlir that no explicit vxpose of x is inserted (review #7).
    cdims = (((0,), (0,)), ((), ()))

    for t in range(tb):
        ri1 = lax.dot_general(x1_ref[t], w1, cdims,
                              preferred_element_type=jnp.float32)        # [HWp, 2D]
        ri2 = lax.dot_general(x2_ref[t], w2, cdims,
                              preferred_element_type=jnp.float32)        # [HWp, 2D]
        r1, i1 = ri1[:, :d], ri1[:, d:]
        r2, i2 = ri2[:, :d], ri2[:, d:]
        pr = r1 * r2 - i1 * i2
        pi = r1 * i2 + i1 * r2
        # Sum-pool over HW before the inverse DFT (iDFT is linear in rows).
        acc_ref[pl.ds(t, 1), pl.ds(0, d)] = jnp.sum(pr, axis=0, keepdims=True)
        acc_ref[pl.ds(t, 1), pl.ds(d, d)] = jnp.sum(pi, axis=0, keepdims=True)

    o_ref[...] = jnp.dot(acc_ref[...], winv_ref[...],
                         preferred_element_type=jnp.float32).astype(o_ref.dtype)


# ------------------------------------ wrapper --------------------------------------

def compact_bilinear_pooling(x1, x2, sk1, sk2, output_dim, *,
                             batch_block=None, use_gram=None,
                             input_dtype=jnp.bfloat16):
    """x1: [B, C1, H, W], x2: [B, C2, H, W] (float32). Returns [B, output_dim] (sum_pool=True)."""
    B, C1, H, W = x1.shape
    B2, C2, H2, W2 = x2.shape
    assert (B, H, W) == (B2, H2, W2)
    D = output_dim  # NOTE: keep D a multiple of 128 for lane-dense splits/stores (review #8).

    if use_gram is None:
        # Gram form wins when channel counts are small; keep the direct form for C >= 128.
        use_gram = max(C1, C2) < 128

    HW = H * W
    HWp = ((HW + 127) // 128) * 128          # pad spatial dim to a lane multiple (review #8)

    if batch_block is None:
        # Review #2: amortize per-step overhead; aim for >=0.5 MB of input DMA per step while
        # keeping >= 2 grid steps (pipelining / megacore) when the batch allows it.
        cands = [t for t in range(8, B // 2 + 1, 8) if B % t == 0]
        if not cands:
            batch_block = B                  # whole batch in one step
        else:
            per_item_bytes = (C1 + C2) * HWp * 2   # bf16 bytes per batch item
            big = [t for t in cands if t * per_item_bytes >= (512 << 10)]
            batch_block = min(big) if big else max(cands)
    assert B % batch_block == 0, "batch_block must divide the batch size"
    # Output block must be sublane-aligned (or cover the whole batch) for unmasked stores.
    assert batch_block % 8 == 0 or batch_block == B
    nb = B // batch_block

    # NCHW -> [B, C, HW]: free reshape (no transpose).  Zero-pad HW (exact no-op through the
    # math) and cast to bf16 so the big input DMAs are half-width (review #5; the cast fuses
    # with the reshape/pad here — with a bf16 producer it would be free).
    x1r = x1.reshape(B, C1, HW)
    x2r = x2.reshape(B, C2, HW)
    if HWp != HW:
        pad = ((0, 0), (0, 0), (0, HWp - HW))
        x1r = jnp.pad(x1r, pad)
        x2r = jnp.pad(x2r, pad)
    x1r = x1r.astype(input_dtype)
    x2r = x2r.astype(input_dtype)

    # Gram form: w1/w2 only feed tiny VPU/small-K work -> keep f32 (accuracy).
    # Direct form: w1/w2 are the big-matmul MXU operands -> bf16 (f32 accumulation).
    w_dtype = jnp.float32 if use_gram else jnp.bfloat16
    w1, w2, winv = fold_constants(sk1, sk2, D, w_dtype)

    kernel = cbp_gram_kernel if use_gram else cbp_direct_kernel

    out = pl.pallas_call(
        kernel,
        out_shape=jax.ShapeDtypeStruct((B, D), jnp.float32),
        grid_spec=pltpu.PrefetchScalarGridSpec(
            num_scalar_prefetch=0,
            grid=(nb,),
            in_specs=[
                pl.BlockSpec((batch_block, C1, HWp), lambda b: (b, 0, 0)),
                pl.BlockSpec((batch_block, C2, HWp), lambda b: (b, 0, 0)),
                # Constant operands (index_map is constant).  At demo D their double-buffered
                # footprint is negligible; for realistic output_dim single-buffer them
                # (pipeline_mode=pl.Buffered(1)) to halve their VMEM use (review #3).
                pl.BlockSpec((C1, 2 * D), lambda b: (0, 0)),
                pl.BlockSpec((C2, 2 * D), lambda b: (0, 0)),
                pl.BlockSpec((2 * D, D), lambda b: (0, 0)),
            ],
            # Each grid step owns a disjoint, (8,128)-aligned output block -> single unmasked
            # lane-dense store per step, and the batch axis can shard across TCs on v7x.
            out_specs=pl.BlockSpec((batch_block, D), lambda b: (b, 0)),
            scratch_shapes=[pltpu.VMEM((batch_block, 2 * D), jnp.float32)],
        ),
        compiler_params=pltpu.CompilerParams(
            dimension_semantics=("parallel",),
            vmem_limit_bytes=32 * 1024 * 1024,  # explicit; far above this kernel's needs.
        ),
    )(x1r, x2r, w1, w2, winv)
    return out


# --------------------------------- pure-JAX reference ------------------------------

def cbp_reference(x1, x2, sk1, sk2, output_dim):
    B, C1, H, W = x1.shape
    _, C2, _, _ = x2.shape
    x1_flat = jnp.transpose(x1, (0, 2, 3, 1)).reshape(-1, C1)
    x2_flat = jnp.transpose(x2, (0, 2, 3, 1)).reshape(-1, C2)
    s1 = x1_flat @ sk1
    s2 = x2_flat @ sk2
    f1 = jnp.fft.fft(s1, axis=-1)
    f2 = jnp.fft.fft(s2, axis=-1)
    cbp_flat = jnp.real(jnp.fft.ifft(f1 * f2, axis=-1))
    cbp = cbp_flat.reshape(B, H, W, output_dim)
    return cbp.sum(axis=(1, 2))


# --------------------------------------- main --------------------------------------

if __name__ == "__main__":
    keys = jax.random.split(jax.random.PRNGKey(0), 8)

    def check(out, ref):
        # bf16 operands with f32 accumulation; many CBP buckets are near-exact zeros from
        # cancellation, so the absolute tolerance is scaled to the output magnitude (~1%).
        scale = float(jnp.max(jnp.abs(ref)))
        np.testing.assert_allclose(np.asarray(out), np.asarray(ref),
                                   rtol=1e-2, atol=1e-2 * scale)

    # Case 1: small channel counts -> Gram-form path.  D=128, HW=256 -> everything lane-dense;
    # B=16 with batch_block=8 -> 2 grid steps, one (8,128) unmasked store each.
    B, C1, C2, H, W, D = 16, 8, 4, 16, 16, 128
    x1 = jax.random.normal(keys[0], (B, C1, H, W), dtype=jnp.float32)
    x2 = jax.random.normal(keys[1], (B, C2, H, W), dtype=jnp.float32)
    sk1 = make_sketch_matrix(keys[2], C1, D)
    sk2 = make_sketch_matrix(keys[3], C2, D)
    out = jax.block_until_ready(compact_bilinear_pooling(x1, x2, sk1, sk2, D))
    check(out, cbp_reference(x1, x2, sk1, sk2, D))

    # Case 2: direct (large-channel-style) path + non-128 HW (100 -> padded to 128).
    B, C1, C2, H, W, D = 8, 16, 16, 10, 10, 128
    x1 = jax.random.normal(keys[4], (B, C1, H, W), dtype=jnp.float32)
    x2 = jax.random.normal(keys[5], (B, C2, H, W), dtype=jnp.float32)
    sk1 = make_sketch_matrix(keys[6], C1, D)
    sk2 = make_sketch_matrix(keys[7], C2, D)
    out2 = jax.block_until_ready(
        compact_bilinear_pooling(x1, x2, sk1, sk2, D, use_gram=False))
    check(out2, cbp_reference(x1, x2, sk1, sk2, D))

    print("KERNEL_OK")
</pallas_src>

<mosaic_0001>
module attributes {stable_mosaic.version = 11 : i64} {
  func.func @cbp_gram_kernel(%arg0: i32, %arg1: memref<8x8x256xbf16, #tpu.memory_space<vmem>>, %arg2: memref<8x4x256xbf16, #tpu.memory_space<vmem>>, %arg3: memref<8x256xf32, #tpu.memory_space<vmem>>, %arg4: memref<4x256xf32, #tpu.memory_space<vmem>>, %arg5: memref<256x128xf32, #tpu.memory_space<vmem>>, %arg6: memref<8x128xf32, #tpu.memory_space<vmem>>, %arg7: memref<8x256xf32, #tpu.memory_space<vmem>>) attributes {dimension_semantics = [#tpu.dimension_semantics<parallel>], iteration_bounds = array<i64: 2>, scalar_prefetch = 0 : i64, scratch_operands = 1 : i64, tpu.core_type = #tpu.core_type<tc>, window_params = [{transform_indices = @transform_0, window_bounds = array<i64: 8, 8, 256>}, {transform_indices = @transform_1, window_bounds = array<i64: 8, 4, 256>}, {pipeline_mode = #tpu.pipeline_mode<synchronous>, transform_indices = @transform_2, window_bounds = array<i64: 8, 256>}, {pipeline_mode = #tpu.pipeline_mode<synchronous>, transform_indices = @transform_3, window_bounds = array<i64: 4, 256>}, {pipeline_mode = #tpu.pipeline_mode<synchronous>, transform_indices = @transform_4, window_bounds = array<i64: 256, 128>}, {transform_indices = @transform_5, window_bounds = array<i64: 8, 128>}]} {
    %c0 = arith.constant 0 : index
    %c0_0 = arith.constant 0 : index
    %0 = vector.load %arg3[%c0, %c0_0] : memref<8x256xf32, #tpu.memory_space<vmem>>, vector<8x256xf32>
    %1 = vector.extract_strided_slice %0 {offsets = [0, 0], sizes = [8, 128], strides = [1, 1]} : vector<8x256xf32> to vector<8x128xf32>
    %2 = vector.extract_strided_slice %0 {offsets = [0, 128], sizes = [8, 128], strides = [1, 1]} : vector<8x256xf32> to vector<8x128xf32>
    %c0_1 = arith.constant 0 : index
    %c0_2 = arith.constant 0 : index
    %3 = vector.load %arg4[%c0_1, %c0_2] : memref<4x256xf32, #tpu.memory_space<vmem>>, vector<4x256xf32>
    %c0_3 = arith.constant 0 : index
    %c0_4 = arith.constant 0 : index
    %c0_5 = arith.constant 0 : index
    %4 = vector.load %arg1[%c0_3, %c0_4, %c0_5] : memref<8x8x256xbf16, #tpu.memory_space<vmem>>, vector<1x8x256xbf16>
    %5 = vector.shape_cast %4 : vector<1x8x256xbf16> to vector<8x256xbf16>
    %c0_6 = arith.constant 0 : index
    %c0_7 = arith.constant 0 : index
    %c0_8 = arith.constant 0 : index
    %6 = vector.load %arg2[%c0_6, %c0_7, %c0_8] : memref<8x4x256xbf16, #tpu.memory_space<vmem>>, vector<1x4x256xbf16>
    %7 = vector.shape_cast %6 : vector<1x4x256xbf16> to vector<4x256xbf16>
    %cst = arith.constant dense<0.000000e+00> : vector<8x4xf32>
    %8 = tpu.matmul %5, %7, %cst {dimension_numbers = #tpu.dot_dimension_numbers<[1], [1], [0], [0], [0, 0, 1, 0], [], []>} : vector<8x256xbf16>, vector<4x256xbf16>, vector<8x4xf32> -> vector<8x4xf32>
    %cst_9 = arith.constant dense<0.000000e+00> : vector<8x256xf32>
    %9 = tpu.matmul %8, %3, %cst_9 {dimension_numbers = #tpu.dot_dimension_numbers<[1], [0], [0], [1], [0, 0, 1, 1], [], []>} : vector<8x4xf32>, vector<4x256xf32>, vector<8x256xf32> -> vector<8x256xf32>
    %10 = vector.extract_strided_slice %9 {offsets = [0, 0], sizes = [8, 128], strides = [1, 1]} : vector<8x256xf32> to vector<8x128xf32>
    %11 = vector.extract_strided_slice %9 {offsets = [0, 128], sizes = [8, 128], strides = [1, 1]} : vector<8x256xf32> to vector<8x128xf32>
    %12 = arith.mulf %1, %10 : vector<8x128xf32>
    %13 = arith.mulf %2, %11 : vector<8x128xf32>
    %14 = arith.subf %12, %13 : vector<8x128xf32>
    %cst_10 = arith.constant dense<0.000000e+00> : vector<128xf32>
    %15 = vector.multi_reduction <add>, %14, %cst_10 [0] : vector<8x128xf32> to vector<128xf32>
    %16 = vector.shape_cast %15 : vector<128xf32> to vector<1x128xf32>
    %17 = arith.mulf %1, %11 : vector<8x128xf32>
    %18 = arith.mulf %2, %10 : vector<8x128xf32>
    %19 = arith.addf %17, %18 : vector<8x128xf32>
    %cst_11 = arith.constant dense<0.000000e+00> : vector<128xf32>
    %20 = vector.multi_reduction <add>, %19, %cst_11 [0] : vector<8x128xf32> to vector<128xf32>
    %21 = vector.shape_cast %20 : vector<128xf32> to vector<1x128xf32>
    %c0_12 = arith.constant 0 : index
    %c0_13 = arith.constant 0 : index
    %22 = vector.load %arg7[%c0_12, %c0_13] : memref<8x256xf32, #tpu.memory_space<vmem>>, vector<1x128xf32>
    tpu.vector_store %arg7[%c0_12, %c0_13], %16 {strides = array<i32>} : memref<8x256xf32, #tpu.memory_space<vmem>>, vector<1x128xf32>,
    %c0_14 = arith.constant 0 : index
    %c128 = arith.constant 128 : index
    %23 = vector.load %arg7[%c0_14, %c128] : memref<8x256xf32, #tpu.memory_space<vmem>>, vector<1x128xf32>
    tpu.vector_store %arg7[%c0_14, %c128], %21 {strides = array<i32>} : memref<8x256xf32, #tpu.memory_space<vmem>>, vector<1x128xf32>,
    %c1 = arith.constant 1 : index
    %c0_15 = arith.constant 0 : index
    %c0_16 = arith.constant 0 : index
    %24 = vector.load %arg1[%c1, %c0_15, %c0_16] : memref<8x8x256xbf16, #tpu.memory_space<vmem>>, vector<1x8x256xbf16>
    %25 = vector.shape_cast %24 : vector<1x8x256xbf16> to vector<8x256xbf16>
    %c1_17 = arith.constant 1 : index
    %c0_18 = arith.constant 0 : index
    %c0_19 = arith.constant 0 : index
    %26 = vector.load %arg2[%c1_17, %c0_18, %c0_19] : memref<8x4x256xbf16, #tpu.memory_space<vmem>>, vector<1x4x256xbf16>
    %27 = vector.shape_cast %26 : vector<1x4x256xbf16> to vector<4x256xbf16>
    %cst_20 = arith.constant dense<0.000000e+00> : vector<8x4xf32>
    %28 = tpu.matmul %25, %27, %cst_20 {dimension_numbers = #tpu.dot_dimension_numbers<[1], [1], [0], [0], [0, 0, 1, 0], [], []>} : vector<8x256xbf16>, vector<4x256xbf16>, vector<8x4xf32> -> vector<8x4xf32>
    %cst_21 = arith.constant dense<0.000000e+00> : vector<8x256xf32>
    %29 = tpu.matmul %28, %3, %cst_21 {dimension_numbers = #tpu.dot_dimension_numbers<[1], [0], [0], [1], [0, 0, 1, 1], [], []>} : vector<8x4xf32>, vector<4x256xf32>, vector<8x256xf32> -> vector<8x256xf32>
    %30 = vector.extract_strided_slice %29 {offsets = [0, 0], sizes = [8, 128], strides = [1, 1]} : vector<8x256xf32> to vector<8x128xf32>
    %31 = vector.extract_strided_slice %29 {offsets = [0, 128], sizes = [8, 128], strides = [1, 1]} : vector<8x256xf32> to vector<8x128xf32>
    %32 = arith.mulf %1, %30 : vector<8x128xf32>
    %33 = arith.mulf %2, %31 : vector<8x128xf32>
    %34 = arith.subf %32, %33 : vector<8x128xf32>
    %cst_22 = arith.constant dense<0.000000e+00> : vector<128xf32>
    %35 = vector.multi_reduction <add>, %34, %cst_22 [0] : vector<8x128xf32> to vector<128xf32>
    %36 = vector.shape_cast %35 : vector<128xf32> to vector<1x128xf32>
    %37 = arith.mulf %1, %31 : vector<8x128xf32>
    %38 = arith.mulf %2, %30 : vector<8x128xf32>
    %39 = arith.addf %37, %38 : vector<8x128xf32>
    %cst_23 = arith.constant dense<0.000000e+00> : vector<128xf32>
    %40 = vector.multi_reduction <add>, %39, %cst_23 [0] : vector<8x128xf32> to vector<128xf32>
    %41 = vector.shape_cast %40 : vector<128xf32> to vector<1x128xf32>
    %c1_24 = arith.constant 1 : index
    %c0_25 = arith.constant 0 : index
    %42 = vector.load %arg7[%c1_24, %c0_25] : memref<8x256xf32, #tpu.memory_space<vmem>>, vector<1x128xf32>
    tpu.vector_store %arg7[%c1_24, %c0_25], %36 {strides = array<i32>} : memref<8x256xf32, #tpu.memory_space<vmem>>, vector<1x128xf32>,
    %c1_26 = arith.constant 1 : index
    %c128_27 = arith.constant 128 : index
    %43 = vector.load %arg7[%c1_26, %c128_27] : memref<8x256xf32, #tpu.memory_space<vmem>>, vector<1x128xf32>
    tpu.vector_store %arg7[%c1_26, %c128_27], %41 {strides = array<i32>} : memref<8x256xf32, #tpu.memory_space<vmem>>, vector<1x128xf32>,
    %c2 = arith.constant 2 : index
    %c0_28 = arith.constant 0 : index
    %c0_29 = arith.constant 0 : index
    %44 = vector.load %arg1[%c2, %c0_28, %c0_29] : memref<8x8x256xbf16, #tpu.memory_space<vmem>>, vector<1x8x256xbf16>
    %45 = vector.shape_cast %44 : vector<1x8x256xbf16> to vector<8x256xbf16>
    %c2_30 = arith.constant 2 : index
    %c0_31 = arith.constant 0 : index
    %c0_32 = arith.constant 0 : index
    %46 = vector.load %arg2[%c2_30, %c0_31, %c0_32] : memref<8x4x256xbf16, #tpu.memory_space<vmem>>, vector<1x4x256xbf16>
    %47 = vector.shape_cast %46 : vector<1x4x256xbf16> to vector<4x256xbf16>
    %cst_33 = arith.constant dense<0.000000e+00> : vector<8x4xf32>
    %48 = tpu.matmul %45, %47, %cst_33 {dimension_numbers = #tpu.dot_dimension_numbers<[1], [1], [0], [0], [0, 0, 1, 0], [], []>} : vector<8x256xbf16>, vector<4x256xbf16>, vector<8x4xf32> -> vector<8x4xf32>
    %cst_34 = arith.constant dense<0.000000e+00> : vector<8x256xf32>
    %49 = tpu.matmul %48, %3, %cst_34 {dimension_numbers = #tpu.dot_dimension_numbers<[1], [0], [0], [1], [0, 0, 1, 1], [], []>} : vector<8x4xf32>, vector<4x256xf32>, vector<8x256xf32> -> vector<8x256xf32>
    %50 = vector.extract_strided_slice %49 {offsets = [0, 0], sizes = [8, 128], strides = [1, 1]} : vector<8x256xf32> to vector<8x128xf32>
    %51 = vector.extract_strided_slice %49 {offsets = [0, 128], sizes = [8, 128], strides = [1, 1]} : vector<8x256xf32> to vector<8x128xf32>
    %52 = arith.mulf %1, %50 : vector<8x128xf32>
    %53 = arith.mulf %2, %51 : vector<8x128xf32>
    %54 = arith.subf %52, %53 : vector<8x128xf32>
    %cst_35 = arith.constant dense<0.000000e+00> : vector<128xf32>
    %55 = vector.multi_reduction <add>, %54, %cst_35 [0] : vector<8x128xf32> to vector<128xf32>
    %56 = vector.shape_cast %55 : vector<128xf32> to vector<1x128xf32>
    %57 = arith.mulf %1, %51 : vector<8x128xf32>
    %58 = arith.mulf %2, %50 : vector<8x128xf32>
    %59 = arith.addf %57, %58 : vector<8x128xf32>
    %cst_36 = arith.constant dense<0.000000e+00> : vector<128xf32>
    %60 = vector.multi_reduction <add>, %59, %cst_36 [0] : vector<8x128xf32> to vector<128xf32>
    %61 = vector.shape_cast %60 : vector<128xf32> to vector<1x128xf32>
    %c2_37 = arith.constant 2 : index
    %c0_38 = arith.constant 0 : index
    %62 = vector.load %arg7[%c2_37, %c0_38] : memref<8x256xf32, #tpu.memory_space<vmem>>, vector<1x128xf32>
    tpu.vector_store %arg7[%c2_37, %c0_38], %56 {strides = array<i32>} : memref<8x256xf32, #tpu.memory_space<vmem>>, vector<1x128xf32>,
    %c2_39 = arith.constant 2 : index
    %c128_40 = arith.constant 128 : index
    %63 = vector.load %arg7[%c2_39, %c128_40] : memref<8x256xf32, #tpu.memory_space<vmem>>, vector<1x128xf32>
    tpu.vector_store %arg7[%c2_39, %c128_40], %61 {strides = array<i32>} : memref<8x256xf32, #tpu.memory_space<vmem>>, vector<1x128xf32>,
    %c3 = arith.constant 3 : index
    %c0_41 = arith.constant 0 : index
    %c0_42 = arith.constant 0 : index
    %64 = vector.load %arg1[%c3, %c0_41, %c0_42] : memref<8x8x256xbf16, #tpu.memory_space<vmem>>, vector<1x8x256xbf16>
    %65 = vector.shape_cast %64 : vector<1x8x256xbf16> to vector<8x256xbf16>
    %c3_43 = arith.constant 3 : index
    %c0_44 = arith.constant 0 : index
    %c0_45 = arith.constant 0 : index
    %66 = vector.load %arg2[%c3_43, %c0_44, %c0_45] : memref<8x4x256xbf16, #tpu.memory_space<vmem>>, vector<1x4x256xbf16>
    %67 = vector.shape_cast %66 : vector<1x4x256xbf16> to vector<4x256xbf16>
    %cst_46 = arith.constant dense<0.000000e+00> : vector<8x4xf32>
    %68 = tpu.matmul %65, %67, %cst_46 {dimension_numbers = #tpu.dot_dimension_numbers<[1], [1], [0], [0], [0, 0, 1, 0], [], []>} : vector<8x256xbf16>, vector<4x256xbf16>, vector<8x4xf32> -> vector<8x4xf32>
    %cst_47 = arith.constant dense<0.000000e+00> : vector<8x256xf32>
    %69 = tpu.matmul %68, %3, %cst_47 {dimension_numbers = #tpu.dot_dimension_numbers<[1], [0], [0], [1], [0, 0, 1, 1], [], []>} : vector<8x4xf32>, vector<4x256xf32>, vector<8x256xf32> -> vector<8x256xf32>
    %70 = vector.extract_strided_slice %69 {offsets = [0, 0], sizes = [8, 128], strides = [1, 1]} : vector<8x256xf32> to vector<8x128xf32>
    %71 = vector.extract_strided_slice %69 {offsets = [0, 128], sizes = [8, 128], strides = [1, 1]} : vector<8x256xf32> to vector<8x128xf32>
    %72 = arith.mulf %1, %70 : vector<8x128xf32>
    %73 = arith.mulf %2, %71 : vector<8x128xf32>
    %74 = arith.subf %72, %73 : vector<8x128xf32>
    %cst_48 = arith.constant dense<0.000000e+00> : vector<128xf32>
    %75 = vector.multi_reduction <add>, %74, %cst_48 [0] : vector<8x128xf32> to vector<128xf32>
    %76 = vector.shape_cast %75 : vector<128xf32> to vector<1x128xf32>
    %77 = arith.mulf %1, %71 : vector<8x128xf32>
    %78 = arith.mulf %2, %70 : vector<8x128xf32>
    %79 = arith.addf %77, %78 : vector<8x128xf32>
    %cst_49 = arith.constant dense<0.000000e+00> : vector<128xf32>
    %80 = vector.multi_reduction <add>, %79, %cst_49 [0] : vector<8x128xf32> to vector<128xf32>
    %81 = vector.shape_cast %80 : vector<128xf32> to vector<1x128xf32>
    %c3_50 = arith.constant 3 : index
    %c0_51 = arith.constant 0 : index
    %82 = vector.load %arg7[%c3_50, %c0_51] : memref<8x256xf32, #tpu.memory_space<vmem>>, vector<1x128xf32>
    tpu.vector_store %arg7[%c3_50, %c0_51], %76 {strides = array<i32>} : memref<8x256xf32, #tpu.memory_space<vmem>>, vector<1x128xf32>,
    %c3_52 = arith.constant 3 : index
    %c128_53 = arith.constant 128 : index
    %83 = vector.load %arg7[%c3_52, %c128_53] : memref<8x256xf32, #tpu.memory_space<vmem>>, vector<1x128xf32>
    tpu.vector_store %arg7[%c3_52, %c128_53], %81 {strides = array<i32>} : memref<8x256xf32, #tpu.memory_space<vmem>>, vector<1x128xf32>,
    %c4 = arith.constant 4 : index
    %c0_54 = arith.constant 0 : index
    %c0_55 = arith.constant 0 : index
    %84 = vector.load %arg1[%c4, %c0_54, %c0_55] : memref<8x8x256xbf16, #tpu.memory_space<vmem>>, vector<1x8x256xbf16>
    %85 = vector.shape_cast %84 : vector<1x8x256xbf16> to vector<8x256xbf16>
    %c4_56 = arith.constant 4 : index
    %c0_57 = arith.constant 0 : index
    %c0_58 = arith.constant 0 : index
    %86 = vector.load %arg2[%c4_56, %c0_57, %c0_58] : memref<8x4x256xbf16, #tpu.memory_space<vmem>>, vector<1x4x256xbf16>
    %87 = vector.shape_cast %86 : vector<1x4x256xbf16> to vector<4x256xbf16>
    %cst_59 = arith.constant dense<0.000000e+00> : vector<8x4xf32>
    %88 = tpu.matmul %85, %87, %cst_59 {dimension_numbers = #tpu.dot_dimension_numbers<[1], [1], [0], [0], [0, 0, 1, 0], [], []>} : vector<8x256xbf16>, vector<4x256xbf16>, vector<8x4xf32> -> vector<8x4xf32>
    %cst_60 = arith.constant dense<0.000000e+00> : vector<8x256xf32>
    %89 = tpu.matmul %88, %3, %cst_60 {dimension_numbers = #tpu.dot_dimension_numbers<[1], [0], [0], [1], [0, 0, 1, 1], [], []>} : vector<8x4xf32>, vector<4x256xf32>, vector<8x256xf32> -> vector<8x256xf32>
    %90 = vector.extract_strided_slice %89 {offsets = [0, 0], sizes = [8, 128], strides = [1, 1]} : vector<8x256xf32> to vector<8x128xf32>
    %91 = vector.extract_strided_slice %89 {offsets = [0, 128], sizes = [8, 128], strides = [1, 1]} : vector<8x256xf32> to vector<8x128xf32>
    %92 = arith.mulf %1, %90 : vector<8x128xf32>
    %93 = arith.mulf %2, %91 : vector<8x128xf32>
    %94 = arith.subf %92, %93 : vector<8x128xf32>
    %cst_61 = arith.constant dense<0.000000e+00> : vector<128xf32>
    %95 = vector.multi_reduction <add>, %94, %cst_61 [0] : vector<8x128xf32> to vector<128xf32>
    %96 = vector.shape_cast %95 : vector<128xf32> to vector<1x128xf32>
    %97 = arith.mulf %1, %91 : vector<8x128xf32>
    %98 = arith.mulf %2, %90 : vector<8x128xf32>
    %99 = arith.addf %97, %98 : vector<8x128xf32>
    %cst_62 = arith.constant dense<0.000000e+00> : vector<128xf32>
    %100 = vector.multi_reduction <add>, %99, %cst_62 [0] : vector<8x128xf32> to vector<128xf32>
    %101 = vector.shape_cast %100 : vector<128xf32> to vector<1x128xf32>
    %c4_63 = arith.constant 4 : index
    %c0_64 = arith.constant 0 : index
    %102 = vector.load %arg7[%c4_63, %c0_64] : memref<8x256xf32, #tpu.memory_space<vmem>>, vector<1x128xf32>
    tpu.vector_store %arg7[%c4_63, %c0_64], %96 {strides = array<i32>} : memref<8x256xf32, #tpu.memory_space<vmem>>, vector<1x128xf32>,
    %c4_65 = arith.constant 4 : index
    %c128_66 = arith.constant 128 : index
    %103 = vector.load %arg7[%c4_65, %c128_66] : memref<8x256xf32, #tpu.memory_space<vmem>>, vector<1x128xf32>
    tpu.vector_store %arg7[%c4_65, %c128_66], %101 {strides = array<i32>} : memref<8x256xf32, #tpu.memory_space<vmem>>, vector<1x128xf32>,
    %c5 = arith.constant 5 : index
    %c0_67 = arith.constant 0 : index
    %c0_68 = arith.constant 0 : index
    %104 = vector.load %arg1[%c5, %c0_67, %c0_68] : memref<8x8x256xbf16, #tpu.memory_space<vmem>>, vector<1x8x256xbf16>
    %105 = vector.shape_cast %104 : vector<1x8x256xbf16> to vector<8x256xbf16>
    %c5_69 = arith.constant 5 : index
    %c0_70 = arith.constant 0 : index
    %c0_71 = arith.constant 0 : index
    %106 = vector.load %arg2[%c5_69, %c0_70, %c0_71] : memref<8x4x256xbf16, #tpu.memory_space<vmem>>, vector<1x4x256xbf16>
    %107 = vector.shape_cast %106 : vector<1x4x256xbf16> to vector<4x256xbf16>
    %cst_72 = arith.constant dense<0.000000e+00> : vector<8x4xf32>
    %108 = tpu.matmul %105, %107, %cst_72 {dimension_numbers = #tpu.dot_dimension_numbers<[1], [1], [0], [0], [0, 0, 1, 0], [], []>} : vector<8x256xbf16>, vector<4x256xbf16>, vector<8x4xf32> -> vector<8x4xf32>
    %cst_73 = arith.constant dense<0.000000e+00> : vector<8x256xf32>
    %109 = tpu.matmul %108, %3, %cst_73 {dimension_numbers = #tpu.dot_dimension_numbers<[1], [0], [0], [1], [0, 0, 1, 1], [], []>} : vector<8x4xf32>, vector<4x256xf32>, vector<8x256xf32> -> vector<8x256xf32>
    %110 = vector.extract_strided_slice %109 {offsets = [0, 0], sizes = [8, 128], strides = [1, 1]} : vector<8x256xf32> to vector<8x128xf32>
    %111 = vector.extract_strided_slice %109 {offsets = [0, 128], sizes = [8, 128], strides = [1, 1]} : vector<8x256xf32> to vector<8x128xf32>
    %112 = arith.mulf %1, %110 : vector<8x128xf32>
    %113 = arith.mulf %2, %111 : vector<8x128xf32>
    %114 = arith.subf %112, %113 : vector<8x128xf32>
    %cst_74 = arith.constant dense<0.000000e+00> : vector<128xf32>
    %115 = vector.multi_reduction <add>, %114, %cst_74 [0] : vector<8x128xf32> to vector<128xf32>
    %116 = vector.shape_cast %115 : vector<128xf32> to vector<1x128xf32>
    %117 = arith.mulf %1, %111 : vector<8x128xf32>
    %118 = arith.mulf %2, %110 : vector<8x128xf32>
    %119 = arith.addf %117, %118 : vector<8x128xf32>
    %cst_75 = arith.constant dense<0.000000e+00> : vector<128xf32>
    %120 = vector.multi_reduction <add>, %119, %cst_75 [0] : vector<8x128xf32> to vector<128xf32>
    %121 = vector.shape_cast %120 : vector<128xf32> to vector<1x128xf32>
    %c5_76 = arith.constant 5 : index
    %c0_77 = arith.constant 0 : index
    %122 = vector.load %arg7[%c5_76, %c0_77] : memref<8x256xf32, #tpu.memory_space<vmem>>, vector<1x128xf32>
    tpu.vector_store %arg7[%c5_76, %c0_77], %116 {strides = array<i32>} : memref<8x256xf32, #tpu.memory_space<vmem>>, vector<1x128xf32>,
    %c5_78 = arith.constant 5 : index
    %c128_79 = arith.constant 128 : index
    %123 = vector.load %arg7[%c5_78, %c128_79] : memref<8x256xf32, #tpu.memory_space<vmem>>, vector<1x128xf32>
    tpu.vector_store %arg7[%c5_78, %c128_79], %121 {strides = array<i32>} : memref<8x256xf32, #tpu.memory_space<vmem>>, vector<1x128xf32>,
    %c6 = arith.constant 6 : index
    %c0_80 = arith.constant 0 : index
    %c0_81 = arith.constant 0 : index
    %124 = vector.load %arg1[%c6, %c0_80, %c0_81] : memref<8x8x256xbf16, #tpu.memory_space<vmem>>, vector<1x8x256xbf16>
    %125 = vector.shape_cast %124 : vector<1x8x256xbf16> to vector<8x256xbf16>
    %c6_82 = arith.constant 6 : index
    %c0_83 = arith.constant 0 : index
    %c0_84 = arith.constant 0 : index
    %126 = vector.load %arg2[%c6_82, %c0_83, %c0_84] : memref<8x4x256xbf16, #tpu.memory_space<vmem>>, vector<1x4x256xbf16>
    %127 = vector.shape_cast %126 : vector<1x4x256xbf16> to vector<4x256xbf16>
    %cst_85 = arith.constant dense<0.000000e+00> : vector<8x4xf32>
    %128 = tpu.matmul %125, %127, %cst_85 {dimension_numbers = #tpu.dot_dimension_numbers<[1], [1], [0], [0], [0, 0, 1, 0], [], []>} : vector<8x256xbf16>, vector<4x256xbf16>, vector<8x4xf32> -> vector<8x4xf32>
    %cst_86 = arith.constant dense<0.000000e+00> : vector<8x256xf32>
    %129 = tpu.matmul %128, %3, %cst_86 {dimension_numbers = #tpu.dot_dimension_numbers<[1], [0], [0], [1], [0, 0, 1, 1], [], []>} : vector<8x4xf32>, vector<4x256xf32>, vector<8x256xf32> -> vector<8x256xf32>
    %130 = vector.extract_strided_slice %129 {offsets = [0, 0], sizes = [8, 128], strides = [1, 1]} : vector<8x256xf32> to vector<8x128xf32>
    %131 = vector.extract_strided_slice %129 {offsets = [0, 128], sizes = [8, 128], strides = [1, 1]} : vector<8x256xf32> to vector<8x128xf32>
    %132 = arith.mulf %1, %130 : vector<8x128xf32>
    %133 = arith.mulf %2, %131 : vector<8x128xf32>
    %134 = arith.subf %132, %133 : vector<8x128xf32>
    %cst_87 = arith.constant dense<0.000000e+00> : vector<128xf32>
    %135 = vector.multi_reduction <add>, %134, %cst_87 [0] : vector<8x128xf32> to vector<128xf32>
    %136 = vector.shape_cast %135 : vector<128xf32> to vector<1x128xf32>
    %137 = arith.mulf %1, %131 : vector<8x128xf32>
    %138 = arith.mulf %2, %130 : vector<8x128xf32>
    %139 = arith.addf %137, %138 : vector<8x128xf32>
    %cst_88 = arith.constant dense<0.000000e+00> : vector<128xf32>
    %140 = vector.multi_reduction <add>, %139, %cst_88 [0] : vector<8x128xf32> to vector<128xf32>
    %141 = vector.shape_cast %140 : vector<128xf32> to vector<1x128xf32>
    %c6_89 = arith.constant 6 : index
    %c0_90 = arith.constant 0 : index
    %142 = vector.load %arg7[%c6_89, %c0_90] : memref<8x256xf32, #tpu.memory_space<vmem>>, vector<1x128xf32>
    tpu.vector_store %arg7[%c6_89, %c0_90], %136 {strides = array<i32>} : memref<8x256xf32, #tpu.memory_space<vmem>>, vector<1x128xf32>,
    %c6_91 = arith.constant 6 : index
    %c128_92 = arith.constant 128 : index
    %143 = vector.load %arg7[%c6_91, %c128_92] : memref<8x256xf32, #tpu.memory_space<vmem>>, vector<1x128xf32>
    tpu.vector_store %arg7[%c6_91, %c128_92], %141 {strides = array<i32>} : memref<8x256xf32, #tpu.memory_space<vmem>>, vector<1x128xf32>,
    %c7 = arith.constant 7 : index
    %c0_93 = arith.constant 0 : index
    %c0_94 = arith.constant 0 : index
    %144 = vector.load %arg1[%c7, %c0_93, %c0_94] : memref<8x8x256xbf16, #tpu.memory_space<vmem>>, vector<1x8x256xbf16>
    %145 = vector.shape_cast %144 : vector<1x8x256xbf16> to vector<8x256xbf16>
    %c7_95 = arith.constant 7 : index
    %c0_96 = arith.constant 0 : index
    %c0_97 = arith.constant 0 : index
    %146 = vector.load %arg2[%c7_95, %c0_96, %c0_97] : memref<8x4x256xbf16, #tpu.memory_space<vmem>>, vector<1x4x256xbf16>
    %147 = vector.shape_cast %146 : vector<1x4x256xbf16> to vector<4x256xbf16>
    %cst_98 = arith.constant dense<0.000000e+00> : vector<8x4xf32>
    %148 = tpu.matmul %145, %147, %cst_98 {dimension_numbers = #tpu.dot_dimension_numbers<[1], [1], [0], [0], [0, 0, 1, 0], [], []>} : vector<8x256xbf16>, vector<4x256xbf16>, vector<8x4xf32> -> vector<8x4xf32>
    %cst_99 = arith.constant dense<0.000000e+00> : vector<8x256xf32>
    %149 = tpu.matmul %148, %3, %cst_99 {dimension_numbers = #tpu.dot_dimension_numbers<[1], [0], [0], [1], [0, 0, 1, 1], [], []>} : vector<8x4xf32>, vector<4x256xf32>, vector<8x256xf32> -> vector<8x256xf32>
    %150 = vector.extract_strided_slice %149 {offsets = [0, 0], sizes = [8, 128], strides = [1, 1]} : vector<8x256xf32> to vector<8x128xf32>
    %151 = vector.extract_strided_slice %149 {offsets = [0, 128], sizes = [8, 128], strides = [1, 1]} : vector<8x256xf32> to vector<8x128xf32>
    %152 = arith.mulf %1, %150 : vector<8x128xf32>
    %153 = arith.mulf %2, %151 : vector<8x128xf32>
    %154 = arith.subf %152, %153 : vector<8x128xf32>
    %cst_100 = arith.constant dense<0.000000e+00> : vector<128xf32>
    %155 = vector.multi_reduction <add>, %154, %cst_100 [0] : vector<8x128xf32> to vector<128xf32>
    %156 = vector.shape_cast %155 : vector<128xf32> to vector<1x128xf32>
    %157 = arith.mulf %1, %151 : vector<8x128xf32>
    %158 = arith.mulf %2, %150 : vector<8x128xf32>
    %159 = arith.addf %157, %158 : vector<8x128xf32>
    %cst_101 = arith.constant dense<0.000000e+00> : vector<128xf32>
    %160 = vector.multi_reduction <add>, %159, %cst_101 [0] : vector<8x128xf32> to vector<128xf32>
    %161 = vector.shape_cast %160 : vector<128xf32> to vector<1x128xf32>
    %c7_102 = arith.constant 7 : index
    %c0_103 = arith.constant 0 : index
    %162 = vector.load %arg7[%c7_102, %c0_103] : memref<8x256xf32, #tpu.memory_space<vmem>>, vector<1x128xf32>
    tpu.vector_store %arg7[%c7_102, %c0_103], %156 {strides = array<i32>} : memref<8x256xf32, #tpu.memory_space<vmem>>, vector<1x128xf32>,
    %c7_104 = arith.constant 7 : index
    %c128_105 = arith.constant 128 : index
    %163 = vector.load %arg7[%c7_104, %c128_105] : memref<8x256xf32, #tpu.memory_space<vmem>>, vector<1x128xf32>
    tpu.vector_store %arg7[%c7_104, %c128_105], %161 {strides = array<i32>} : memref<8x256xf32, #tpu.memory_space<vmem>>, vector<1x128xf32>,
    %c0_106 = arith.constant 0 : index
    %c0_107 = arith.constant 0 : index
    %164 = vector.load %arg7[%c0_106, %c0_107] : memref<8x256xf32, #tpu.memory_space<vmem>>, vector<8x256xf32>
    %c0_108 = arith.constant 0 : index
    %c0_109 = arith.constant 0 : index
    %165 = vector.load %arg5[%c0_108, %c0_109] : memref<256x128xf32, #tpu.memory_space<vmem>>, vector<256x128xf32>
    %cst_110 = arith.constant dense<0.000000e+00> : vector<8x128xf32>
    %166 = tpu.matmul %164, %165, %cst_110 {dimension_numbers = #tpu.dot_dimension_numbers<[1], [0], [0], [1], [0, 0, 1, 1], [], []>} : vector<8x256xf32>, vector<256x128xf32>, vector<8x128xf32> -> vector<8x128xf32>
    %c0_111 = arith.constant 0 : index
    %c0_112 = arith.constant 0 : index
    %167 = vector.load %arg6[%c0_111, %c0_112] : memref<8x128xf32, #tpu.memory_space<vmem>>, vector<8x128xf32>
    tpu.vector_store %arg6[%c0_111, %c0_112], %166 {strides = array<i32>} : memref<8x128xf32, #tpu.memory_space<vmem>>, vector<8x128xf32>,
    return
  }
  func.func @transform_0(%arg0: i32) -> (i32, i32, i32) {
    %c0_i32 = arith.constant 0 : i32
    %c0_i32_0 = arith.constant 0 : i32
    %c0_i32_1 = arith.constant 0 : i32
    return %arg0, %c0_i32, %c0_i32_0 : i32, i32, i32
  }
  func.func @transform_1(%arg0: i32) -> (i32, i32, i32) {
    %c0_i32 = arith.constant 0 : i32
    %c0_i32_0 = arith.constant 0 : i32
    %c0_i32_1 = arith.constant 0 : i32
    return %arg0, %c0_i32, %c0_i32_0 : i32, i32, i32
  }
  func.func @transform_2(%arg0: i32) -> (i32, i32) {
    %c0_i32 = arith.constant 0 : i32
    %c0_i32_0 = arith.constant 0 : i32
    %c0_i32_1 = arith.constant 0 : i32
    return %c0_i32, %c0_i32_0 : i32, i32
  }
  func.func @transform_3(%arg0: i32) -> (i32, i32) {
    %c0_i32 = arith.constant 0 : i32
    %c0_i32_0 = arith.constant 0 : i32
    %c0_i32_1 = arith.constant 0 : i32
    return %c0_i32, %c0_i32_0 : i32, i32
  }
  func.func @transform_4(%arg0: i32) -> (i32, i32) {
    %c0_i32 = arith.constant 0 : i32
    %c0_i32_0 = arith.constant 0 : i32
    %c0_i32_1 = arith.constant 0 : i32
    return %c0_i32, %c0_i32_0 : i32, i32
  }
  func.func @transform_5(%arg0: i32) -> (i32, i32) {
    %c0_i32 = arith.constant 0 : i32
    %c0_i32_0 = arith.constant 0 : i32
    return %arg0, %c0_i32 : i32, i32
  }
}

</mosaic_0001>

<bundles_post_ra>
// kernel: tpu_custom_call.1
= control target key start
LH: loop header
LB: loop body
LE: loop exit
PB: predicated region body
PF: predicated region fallthrough
CT: control target
= control target key end

     0   :  { %s2669_s0 = inlined_call_operand.hbm [shape: bf16[16,8,256], index: 0, kind: input, shape index: {}]   ;;  %s2670_s1 = inlined_call_operand.hbm [shape: bf16[16,4,256], index: 1, kind: input, shape index: {}]   ;;  %s2671_s2 = inlined_call_operand.hbm [shape: f32[8,256], index: 2, kind: input, shape index: {}]   ;;  %s2672_s3 = inlined_call_operand.hbm [shape: f32[4,256], index: 3, kind: input, shape index: {}]   ;;  %s2673_s4 = inlined_call_operand.hbm [shape: f32[256,128], index: 4, kind: input, shape index: {}]   ;;  %s2674_s5 = inlined_call_operand.hbm [shape: f32[16,128], index: 5, kind: output, shape index: {}]  }
   0x1   :  { %2678 = sst [smem:[#allocation18_spill]] %s2669_s0 }
   0x2   :  { %2679 = sst [smem:[#allocation19_spill]] %s2671_s2 }
   0x3   :  { %2680 = sst [smem:[#allocation20_spill]] %s2672_s3 }
   0x4   :  { %10 = vsyncpa [#allocation4], 0 }
   0x5   :  { %12 = vsyncpa [#allocation4 + $0x1], 0 }
   0x6   :  { %13 = vsyncpa [#allocation7], 0 }
   0x7   :  { %15 = vsyncpa [#allocation7 + $0x1], 0 }
   0x8   :  { %16 = vsyncpa [#allocation10], 0 }
   0x9   :  { %17 = vsyncpa [#allocation5], 0 }
   0xa   :  { %19 = vsyncpa [#allocation5 + $0x1], 0  ;;  %s2307_s18 = smov 0   ;;  %s2309_s19 = smov 0  }
   0xb   :  { %s2311_s20 = smov 0   ;;  %s2313_s21 = smov 0  }
   0xc LB: > { %s2328_s22 = sadd.s32 4294967295, %s2264_s21   ;;  %s1824_s23 = sadd.s32 4294967294, %s2264_s21   ;;  %s2264_s21 = sphi %s2313_s21, %s2704_s21   ;;  %s2260_s20 = sphi %s2311_s20, %s2703_s20   ;;  %s2256_s19 = sphi %s2309_s19, %s2702_s19   ;;  %s2252_s18 = sphi %s2307_s18, %s2701_s18  }
   0xd   : > { %p45_p0 = scmp.ne.s32.totalorder %s2256_s19, %s2252_s18  ;;  %p2675_p1 = scmp.eq.s32.totalorder %s2328_s22, 0 }
   0xe   : > { %p164_p3 = scmp.eq.s32.totalorder %s1824_s23, 1  ;;  %p1825_p5 = scmp.ge.s32.totalorder %s2264_s21, 1 }
   0xf   : > { %p2337_p4 = por %p2675_p1, %p45_p0  ;;  %p171_p7 = scmp.lt.s32.totalorder %s2264_s21, 3 }
  0x10   : > { %p2342_p6 = por %p164_p3, %p45_p0  ;;  %s2266_s27 = smov [#allocation8]  }
  0x11   : > { %s2681_s24 = scalar_select %p2337_p4, 1, 0 }
  0x12   : > { %s2682_s25 = scalar_select %p2342_p6, 1, 0 }
  0x13   : > { %p2347_p8 = pnand %p1825_p5, %p171_p7  ;;  %s184_s28 = sshll.u32 %s2266_s27, 4  ;;  %s185_s28 = int_to_ptr.vmem [resolvable:$true] %s184_s28 }
  0x14   : > { %s2267_s29 = smov [#allocation9]   ;;  %s2268_s7 = smov [#allocation11]  }
  0x15   : > { %s2683_s26 = scalar_select %p2347_p8, 1, 0 }
  0x16   : > { %p1968_p10 = pneg %p2347_p8  ;;  %s195_s30 = sshll.u32 %s2267_s29, 4  ;;  %s196_s30 = int_to_ptr.vmem [resolvable:$true] %s195_s30 }
  0x17   : > { %s205_s8 = sshll.u32 %s2268_s7, 4  ;;  %s2065_s9 = scalar_lea.vmem %s185_s28, 256  ;;  %s2360_s8 = int_to_ptr.vmem [resolvable:$true] %s205_s8 }
  0x18   : > { %p2356_p11 = pnand %p1968_p10, %p2675_p1  ;;  %p2066_p13 = scmp.ne.s32.totalorder %s185_s28, %s2065_s9 }
  0x19   : > { %p2073_p5 = scmp.lt.s32.totalorder %s185_s28, %s185_s28  ;;  %p2074_p7 = scmp.lt.s32.totalorder %s2065_s9, %s2065_s9 }
  0x1a   : > { %p2056_p12 = pneg %p2356_p11 }
  0x1b   : > { %p2075_p10 = por %p2074_p7, %p2073_p5 }
  0x1c   : > { %p2068_p0 = pnand %p2066_p13, %p2056_p12 }
  0x1e   : > { %p2069_p3 = pneg %p2068_p0 }
  0x20   : > { %p2076_p9 = pnand %p2075_p10, %p2069_p3 }
  0x22   : > { %2079 = shalt.err (!%p2076_p9)
}
  0x23   : > { %s2685_s2 = sld [smem:[#allocation19_spill]]  ;;  %s2091_s12 = scalar_lea.vmem %s196_s30, 128 }
  0x24   : > { %p2092_p1 = scmp.ne.s32.totalorder %s196_s30, %s2091_s12  ;;  %p2099_p13 = scmp.lt.s32.totalorder %s196_s30, %s196_s30 }
  0x25   : > { %p2100_p0 = scmp.lt.s32.totalorder %s2091_s12, %s2091_s12 }
  0x26   : > { %p2094_p2 = pnand %p2092_p1, %p2056_p12 }
  0x27   : > { %p2101_p4 = por %p2100_p0, %p2099_p13 }
  0x28   : > { %p2095_p6 = pneg %p2094_p2 }
  0x29   : > { %1971 = dma.hbm_to_vmem [thread:$0]  (!%p2356_p11), %s2685_s2, 256, %s185_s28, [#allocation7]  }
  0x2a   : > { %p2102_p8 = pnand %p2101_p4, %p2095_p6 }
  0x2c   : > { %2105 = shalt.err (!%p2102_p8)
}
  0x2d   : > { %s2686_s3 = sld [smem:[#allocation20_spill]]  ;;  %s2117_s15 = scalar_lea.vmem %s2360_s8, 4096 }
  0x2e   : > { %p2118_p9 = scmp.ne.s32.totalorder %s2360_s8, %s2117_s15  ;;  %p2125_p3 = scmp.lt.s32.totalorder %s2360_s8, %s2360_s8 }
  0x2f   : > { %p2126_p4 = scmp.lt.s32.totalorder %s2117_s15, %s2117_s15 }
  0x30   : > { %p2120_p1 = pnand %p2118_p9, %p2056_p12 }
  0x31   : > { %p2127_p6 = por %p2126_p4, %p2125_p3 }
  0x32   : > { %p2121_p2 = pneg %p2120_p1 }
  0x33   : > { %1974 = dma.hbm_to_vmem [thread:$0]  (!%p2356_p11), %s2686_s3, 128, %s196_s30, [#allocation10]  }
  0x34   : > { %p2128_p8 = pnand %p2127_p6, %p2121_p2 }
  0x36   : > { %2131 = shalt.err (!%p2128_p8)
}
  0x37   : > { %s2269_s16 = smov 128   ;;  %s2270_s17 = smov 8  }
  0x38   : > { %1977 = dma.hbm_to_vmem [thread:$0]  (!%p2356_p11), %s2673_s4, 4096, %s2360_s8, [#allocation10], %s2269_s16, %s2269_s16, %s2270_s17  }
  0x39   : > { %s2397_s28 = sadd.s32 1, %s2264_s21   ;;  %s32_s30 = sadd.s32 1, %s2260_s20 }
  0x3a   : > { %s29_s29 = ssub.s32 %s2264_s21, %s2397_s28  ;;  %p39_p5 = scmp.ne.s32.totalorder %s2260_s20, %s2256_s19 }
  0x3b   : > { %p30_p12 = scmp.eq.s32.totalorder %s29_s29, 0  ;;  %p40_p7 = scmp.eq.s32.totalorder %s2264_s21, 0 }
  0x3c   : > { %p1992_p10 = scmp.lt.s32.totalorder %s2264_s21, 2  ;;  %p2687_p0 = scmp.eq.s32.totalorder %s2328_s22, 1 }
  0x3d   : > { %s2407_s7 = scalar_select %p30_p12, %s2260_s20, %s32_s30  }
  0x3e   : > { %p41_p13 = por %p40_p7, %p39_p5  ;;  %p2411_p9 = por %p2687_p0, %p39_p5 }
  0x3f   : > { %s2416_s9 = sand.u32 1, %s2260_s20   ;;  %s1912_s8 = sshll.u32 %s2264_s21, 10 }
  0x40   : > { %s1830_s10 = sshll.u32 %s2416_s9, 6  ;;  %s2689_s0 = sld [smem:[#allocation18_spill]] }
  0x41   : > { %s223_s14 = scalar_lea.vmem [#allocation3], %s1830_s10  ;;  %p2425_p11 = pnand %p1992_p10, %p41_p13 }
  0x42   : > { %s231_s15 = sshll.u32 %s223_s14, 4  ;;  %s2429_s15 = int_to_ptr.vmem [resolvable:$true] %s231_s15 }
  0x43   : > { %p2134_p2 = pneg %p2425_p11 }
  0x46   : > { %s2423_s13 = scalar_lea.hbm %s2689_s0, %s1912_s8  ;;  %s2137_s11 = scalar_lea.hbm %s2689_s0, 2048 }
  0x47   : > { %s2132_s30 = scalar_lea.hbm %s2423_s13, 1024  ;;  %p2138_p6 = scmp.lt.s32.totalorder %s2423_s13, %s2689_s0 }
  0x48   : > { %p2133_p1 = scmp.ne.s32.totalorder %s2423_s13, %s2132_s30  ;;  %p2139_p8 = scmp.lt.s32.totalorder %s2137_s11, %s2132_s30 }
  0x4a   : > { %p2135_p3 = pnand %p2134_p2, %p2133_p1  ;;  %p2140_p12 = por %p2139_p8, %p2138_p6 }
  0x4c   : > { %p2136_p4 = pneg %p2135_p3 }
  0x4e   : > { %p2141_p5 = pnand %p2140_p12, %p2136_p4 }
  0x50   : > { %2144 = shalt.err (!%p2141_p5)
}
  0x51   : > { %s2145_s27 = scalar_lea.vmem %s2429_s15, 1024  ;;  %s2271_s8 = smov [#allocation3]  }
  0x52   : > { %p2146_p7 = scmp.ne.s32.totalorder %s2429_s15, %s2145_s27  ;;  %s2150_s10 = sshll.u32 %s2271_s8, 4  ;;  %s2151_s10 = int_to_ptr.vmem [resolvable:$false] %s2150_s10 }
  0x53   : > { %s2152_s29 = scalar_lea.vmem %s2151_s10, 2048  ;;  %p2153_p0 = scmp.lt.s32.totalorder %s2429_s15, %s2151_s10 }
  0x54   : > { %p2148_p10 = pnand %p2146_p7, %p2134_p2  ;;  %p2154_p1 = scmp.lt.s32.totalorder %s2152_s29, %s2145_s27 }
  0x56   : > { %p2149_p13 = pneg %p2148_p10  ;;  %p2155_p3 = por %p2154_p1, %p2153_p0 }
  0x58   : > { %p2156_p6 = pnand %p2155_p3, %p2149_p13 }
  0x5a   : > { %2159 = shalt.err (!%p2156_p6)
}
  0x5b   : > { %s2691_s30 = scalar_lea.sflag [#allocation4], %s2416_s9  ;;  %s1834_s11 = sshll.u32 %s2416_s9, 5 }
  0x5c   : > { %1981 = dma.hbm_to_vmem [thread:$0]  (!%p2425_p11), %s2423_s13, 1024, %s2429_s15, %s2691_s30, %s2269_s16, %s2269_s16, %s2270_s17  }
  0x5d   : > { %s1914_s12 = sshll.u32 %s2264_s21, 9  ;;  %s245_s8 = scalar_lea.vmem [#allocation6], %s1834_s11 }
  0x5e   : > { %s2467_s14 = scalar_lea.hbm %s2670_s1, %s1914_s12  ;;  %s253_s10 = sshll.u32 %s245_s8, 4  ;;  %s2469_s10 = int_to_ptr.vmem [resolvable:$true] %s253_s10 }
  0x5f   : > { %s2692_s0 = sand.u32 1, %s2264_s21   ;;  %s2160_s3 = scalar_lea.hbm %s2467_s14, 512 }
  0x60   : > { %s2473_s2 = scalar_lea.sflag [#allocation7], %s2692_s0  ;;  %p2161_p4 = scmp.ne.s32.totalorder %s2467_s14, %s2160_s3 }
  0x61   : > { %s2165_s9 = scalar_lea.hbm %s2670_s1, 1024  ;;  %p2166_p5 = scmp.lt.s32.totalorder %s2467_s14, %s2670_s1 }
  0x62   : > { %p2163_p8 = pnand %p2161_p4, %p2134_p2  ;;  %p2167_p7 = scmp.lt.s32.totalorder %s2165_s9, %s2160_s3 }
  0x64   : > { %p2164_p12 = pneg %p2163_p8  ;;  %p2168_p10 = por %p2167_p7, %p2166_p5 }
  0x66   : > { %p2169_p13 = pnand %p2168_p10, %p2164_p12 }
  0x68   : > { %2172 = shalt.err (!%p2169_p13)
}
  0x69   : > { %s2173_s0 = scalar_lea.vmem %s2469_s10, 512  ;;  %s2272_s30 = smov [#allocation6]  }
  0x6a   : > { %p2174_p0 = scmp.ne.s32.totalorder %s2469_s10, %s2173_s0  ;;  %s2178_s11 = sshll.u32 %s2272_s30, 4  ;;  %s2179_s11 = int_to_ptr.vmem [resolvable:$false] %s2178_s11 }
  0x6b   : > { %s2180_s12 = scalar_lea.vmem %s2179_s11, 1024  ;;  %p2181_p6 = scmp.lt.s32.totalorder %s2469_s10, %s2179_s11 }
  0x6c   : > { %p2176_p1 = pnand %p2174_p0, %p2134_p2  ;;  %p2182_p4 = scmp.lt.s32.totalorder %s2180_s12, %s2173_s0 }
  0x6e   : > { %p2177_p3 = pneg %p2176_p1  ;;  %p2183_p8 = por %p2182_p4, %p2181_p6 }
  0x70   : > { %p2184_p5 = pnand %p2183_p8, %p2177_p3 }
  0x72   : > { %2187 = shalt.err (!%p2184_p5)
}
  0x73   : > { %s2273_s3 = smov 64   ;;  %s2274_s27 = smov 4  }
  0x74   : > { %1984 = dma.hbm_to_vmem [thread:$0]  (!%p2425_p11), %s2467_s14, 512, %s2469_s10, %s2473_s2, %s2273_s3, %s2273_s3, %s2274_s27  }
  0x75   : > { %p2693_p2 = scmp.ne.s32.totalorder %s2683_s26, 0 }
  0x76   : > { %s2501_s29 = sand.u32 (!%p2693_p2), 1, %s2256_s19   ;;  %p2694_p12 = scmp.ne.s32.totalorder (!%p2693_p2), %s2681_s24, 0 }
  0x77   : > { %265 = sbr.rel (%p2693_p2) target bundleno = 1404 (0x57c), region = 40  ;;  %s1839_s8 = sshll.u32 (!%p2693_p2), %s2501_s29, 6 }
  0x78   : > { %s268_s16 = scalar_lea.sflag (!%p2693_p2), [#allocation4], %s2501_s29  ;;  %s2505_s17 = scalar_lea.vmem (!%p2693_p2), [#allocation3], %s1839_s8 }
  0x7c   : > { %2231 = dma.done.wait (%p2694_p12), %s268_s16, 1024  }
  0x7d   : > { %2233 = vsyncadd (%p2694_p12), %s268_s16, 4294966272  ;;  %s276_s2 = sand.u32 1, %s2328_s22   ;;  %s1840_s26 = sshll.u32 %s2501_s29, 5 }
  0x7e   : > { %s277_s23 = scalar_lea.sflag [#allocation7], %s276_s2  ;;  %s2513_s14 = scalar_lea.vmem [#allocation6], %s1840_s26 }
  0x7f   : > { %2235 = dma.done.wait (%p2694_p12), %s277_s23, 512  }
  0x80   : > { %2237 = vsyncadd (%p2694_p12), %s277_s23, 4294966784  ;;  %p2695_p11 = scmp.eq.s32.totalorder %s2328_s22, 0 }
  0x82   : > { %2239 = dma.done.wait (%p2695_p11), [#allocation7], 256   ;;  %p2696_p7 = pmov %p2695_p11 }
  0x84   : > { %2241 = vsyncadd (%p2696_p7), [#allocation7], 4294967040  ;;  %p2697_p10 = pmov %p2696_p7 }
  0x85   : > { %p2698_p13 = pmov %p2696_p7 }
  0x86   : > { %2243 = dma.done.wait (%p2697_p10), [#allocation10], 4224  }
  0x87   : > { %2245 = vsyncadd (%p2698_p13), [#allocation10], 4294963072  ;;  %v1847_v0 = vld.sshfl [vmem:[%s2513_s14] sm:$0x33 pattern:$0x76325410] }
  0x88   : > { %v330_v1 = vld [vmem:[%s2505_s17] sm:$0xff]  ;;  %v2529_v2 = vld [vmem:[#allocation9] sm:$0xff]  ;;  %v347_v3 = vcombine.high %v1847_v0, %v1847_v0  ;;  %vm396_vm0 = vcmask 1043456   ;;  %v2275_v9 = vmov 0.0   ;;  %v1851_v10 = vld [vmem:[%s2505_s17 + $0x8] sm:$0xff]  ;;  %vm392_vm1 = vcmask 31744  }
  0x89   : > { %v1846_v4 = vcombine.high %v330_v1, %v330_v1  ;;  %v2533_v5 = vcombine.high %v2529_v2, %v2529_v2  ;;  %v1845_v6 = vcombine.low %v330_v1, %v330_v1  ;;  %v1855_v7 = vld.sshfl [vmem:[%s2513_s14 + $0x4] sm:$0x33 pattern:$0x76325410]  ;;  %621 = vmatprep.mubr.f32.mxu0 %v2275_v9  ;;  %v1854_v12 = vcombine.high %v1851_v10, %v1851_v10  ;;  %v1859_v16 = vld [vmem:[%s2505_s17 + $0x10] sm:$0xff]  ;;  %v1867_v23 = vld [vmem:[%s2505_s17 + $0x18] sm:$0xff] }
  0x8a   : > { %364 = vmatprep.subr.bf16.mxu1 %v347_v3  ;;  %v511_v8 = vcombine.high %v1855_v7, %v1855_v7  ;;  %v1863_v11 = vld.sshfl [vmem:[%s2513_s14 + $0x8] sm:$0x33 pattern:$0x76325410]  ;;  %v1853_v19 = vcombine.low %v1851_v10, %v1851_v10  ;;  %v1862_v21 = vcombine.high %v1859_v16, %v1859_v16  ;;  %v1861_v24 = vcombine.low %v1859_v16, %v1859_v16  ;;  %v2561_v27 = vld [vmem:[#allocation8] sm:$0xff]  ;;  %s1844_s24 = sshll.u32 %s2501_s29, 3 }
  0x8b   : > { %382 = vmatprep.mubr.bf16.mxu1 %v1846_v4  ;;  %365 = vmatpush1.bf16.xpose.msra.mxu1 %v1847_v0  ;;  %v667_v13 = vcombine.high %v1863_v11, %v1863_v11  ;;  %v1871_v18 = vld.sshfl [vmem:[%s2513_s14 + $0xc] sm:$0x33 pattern:$0x76325410]  ;;  %v1870_v25 = vcombine.high %v1867_v23, %v1867_v23  ;;  %v1869_v26 = vcombine.low %v1867_v23, %v1867_v23  ;;  %v1875_v57 = vld [vmem:[%s2505_s17 + $0x20] sm:$0xff]  ;;  %s1908_s10 = sshll.u32 %s2328_s22, 7 }
  0x8c   : > { %1856 = vmatprep.subr.msk.mxu0 %vm396_vm0, %v2533_v5  ;;  %1848 = vmatprep.subr.msk.mxu1 %vm396_vm0, %v2533_v5  ;;  %v823_v22 = vcombine.high %v1871_v18, %v1871_v18  ;;  %v2563_v28 = vld [vmem:[#allocation8 + $0x8] sm:$0xff]  ;;  %v1879_v46 = vld.sshfl [vmem:[%s2513_s14 + $0x10] sm:$0x33 pattern:$0x76325410]  ;;  %v1878_v61 = vcombine.high %v1875_v57, %v1875_v57  ;;  %v1877_v4 = vcombine.low %v1875_v57, %v1875_v57  ;;  %s323_s9 = scalar_lea.vmem [#allocation12], %s1844_s24  ;;  %s1701_s30 = scalar_lea.hbm %s2674_s5, %s1908_s10 }
  0x8d   : > { %1857 = vmatpush1.msk.msra.mxu0 %vm396_vm0, %v2529_v2  ;;  %v979_v52 = vcombine.high %v1879_v46, %v1879_v46  ;;  %v1887_v59 = vld.sshfl [vmem:[%s2513_s14 + $0x14] sm:$0x33 pattern:$0x76325410]  ;;  %v1883_v1 = vld [vmem:[%s2505_s17 + $0x28] sm:$0xff]  ;;  %s1703_s13 = sshll.u32 %s323_s9, 4  ;;  %s1704_s13 = int_to_ptr.vmem [resolvable:$true] %s1703_s13 }
  0x8e   : > { %1864 = vmatprep.subr.msk.mxu0 %vm396_vm0, %v2533_v5  ;;  %v1135_v62 = vcombine.high %v1887_v59, %v1887_v59  ;;  %s1690_s11 = scalar_lea.sflag [#allocation5], %s2501_s29  ;;  %s2188_s12 = scalar_lea.vmem %s1704_s13, 128 }
  0x8f   : > { %p2189_p0 = scmp.ne.s32.totalorder %s1704_s13, %s2188_s12  ;;  %s2276_s3 = smov [#allocation12]  }
  0x90   : > { %s2192_s27 = sshll.u32 %s2276_s3, 4  ;;  %s2193_s27 = int_to_ptr.vmem [resolvable:$false] %s2192_s27 }
  0x91   : > { %p2190_p1 = pnand %p2189_p0, %p2411_p9  ;;  %s2194_s22 = scalar_lea.vmem %s2193_s27, 256 }
  0x92   : > { %383 = vmatmul.mubr.bf16.vlgmr.msra.gmra.mxu1 %v1845_v6  ;;  %p2195_p6 = scmp.lt.s32.totalorder %s1704_s13, %s2193_s27  ;;  %p2196_p4 = scmp.lt.s32.totalorder %s2194_s22, %s2188_s12 }
  0x93   : > { %1849 = vmatpush1.msk.msra.mxu1 %vm396_vm0, %v2529_v2  ;;  %465 = vmatprep.mubr.f32.mxu1 %v2275_v9  ;;  %p2191_p3 = pneg %p2190_p1 }
  0x94   : > { %528 = vmatprep.subr.bf16.mxu1 %v511_v8  ;;  %v1885_v8 = vcombine.low %v1883_v1, %v1883_v1  ;;  %p2197_p8 = por %p2196_p4, %p2195_p6 }
  0x96   : > { %p2198_p5 = pnand %p2197_p8, %p2191_p3 }
 0x152   : > { %v384_v14 = vpop.f32.mrf.mxu1 }
 0x153   : > { %1850 = vmatmul.mubr.msk.f32.vlgmr.msra.gmra.mxu1 %vm392_vm1, %v384_v14 }
 0x154   : > { %529 = vmatpush1.bf16.xpose.msra.mxu1 %v1855_v7  ;;  %v386_v15 = vpop.f32.mrf.mxu1  ;;  %546 = vmatprep.mubr.bf16.mxu1 %v1854_v12  ;;  %v1886_v7 = vcombine.high %v1883_v1, %v1883_v1 }
 0x155   : > { %684 = vmatprep.subr.bf16.mxu1 %v667_v13 }
 0x156   : > { %v387_v17 = vpop.f32.mrf.mxu1 }
 0x158   : > { %v388_v20 = vpop.f32.mrf.mxu1 }
 0x15b   : > { %547 = vmatmul.mubr.bf16.vlgmr.msra.gmra.mxu1 %v1853_v19 }
 0x15c   : > { %685 = vmatpush1.bf16.xpose.msra.mxu1 %v1863_v11  ;;  %702 = vmatprep.mubr.bf16.mxu1 %v1862_v21 }
 0x15d   : > { %840 = vmatprep.subr.bf16.mxu1 %v823_v22 }
 0x163   : > { %703 = vmatmul.mubr.bf16.vlgmr.msra.gmra.mxu1 %v1861_v24 }
 0x164   : > { %841 = vmatpush1.bf16.xpose.msra.mxu1 %v1871_v18  ;;  %858 = vmatprep.mubr.bf16.mxu1 %v1870_v25 }
 0x165   : > { %1880 = vmatprep.subr.msk.mxu1 %vm396_vm0, %v2533_v5 }
 0x16b   : > { %859 = vmatmul.mubr.bf16.vlgmr.msra.gmra.mxu1 %v1869_v26 }
 0x16c   : > { %1881 = vmatpush1.msk.msra.mxu1 %vm396_vm0, %v2529_v2  ;;  %1089 = vmatprep.mubr.f32.mxu1 %v2275_v9 }
 0x16d   : > { %1888 = vmatprep.subr.msk.mxu1 %vm396_vm0, %v2533_v5 }
 0x213   : > { %v467_v29 = vpop.f32.mrf.mxu1 }
 0x214   : > { %v472_v31 = vmul.f32 %v467_v29, %v2561_v27  ;;  %v482_v32 = vmul.f32 %v467_v29, %v2563_v28 }
 0x215   : > { %v469_v30 = vpop.f32.mrf.mxu1 }
 0x216   : > { %v473_v33 = vmul.f32 %v469_v30, %v2563_v28  ;;  %v481_v34 = vmul.f32 %v469_v30, %v2561_v27 }
 0x218   : > { %v474_v35 = vsub.f32 %v472_v31, %v473_v33  ;;  %v483_v36 = vadd.f32 %v482_v32, %v481_v34 }
 0x21a   : > { %v475_v37 = vrot.slane %v474_v35, 4  ;;  %v484_v38 = vrot.slane %v483_v36, 4 }
 0x21b   : > { %v548_v39 = vpop.f32.mrf.mxu1 }
 0x21c   : > { %v476_v40 = vadd.f32 %v475_v37, %v474_v35  ;;  %v485_v41 = vadd.f32 %v484_v38, %v483_v36  ;;  %1858 = vmatmul.mubr.msk.f32.vlgmr.msra.gmra.mxu0 %vm392_vm1, %v548_v39 }
 0x21d   : > { %v550_v42 = vpop.f32.mrf.mxu1  ;;  %1865 = vmatpush1.msk.msra.mxu0 %vm396_vm0, %v2529_v2  ;;  %777 = vmatprep.mubr.f32.mxu0 %v2275_v9 }
 0x21e   : > { %v477_v43 = vrot.slane %v476_v40, 2  ;;  %v486_v44 = vrot.slane %v485_v41, 2  ;;  %1872 = vmatprep.subr.msk.mxu0 %vm396_vm0, %v2533_v5 }
 0x21f   : > { %v551_v45 = vpop.f32.mrf.mxu1 }
 0x220   : > { %v478_v47 = vadd.f32 %v477_v43, %v476_v40  ;;  %v487_v48 = vadd.f32 %v486_v44, %v485_v41 }
 0x221   : > { %v552_v49 = vpop.f32.mrf.mxu1 }
 0x222   : > { %v479_v50 = vrot.slane %v478_v47, 1  ;;  %v488_v51 = vrot.slane %v487_v48, 1 }
 0x223   : > { %v704_v53 = vpop.f32.mrf.mxu1 }
 0x224   : > { %v480_v54 = vadd.f32 %v479_v50, %v478_v47  ;;  %v489_v55 = vadd.f32 %v488_v51, %v487_v48  ;;  %1866 = vmatmul.mubr.msk.f32.vlgmr.msra.gmra.mxu0 %vm392_vm1, %v704_v53  ;;  %v1895_v51 = vld.sshfl [vmem:[%s2513_s14 + $0x18] sm:$0x33 pattern:$0x76325410] }
 0x225   : > { %v706_v56 = vpop.f32.mrf.mxu1  ;;  %1873 = vmatpush1.msk.msra.mxu0 %vm396_vm0, %v2529_v2  ;;  %933 = vmatprep.mubr.f32.mxu0 %v2275_v9 }
 0x226   : > { %490 = vst [vmem:[#allocation2] sm:$0x1] %v480_v54  ;;  %491 = vst [vmem:[#allocation2 + $0x8] sm:$0x1] %v489_v55  ;;  %996 = vmatprep.subr.bf16.mxu0 %v979_v52  ;;  %v1291_v56 = vcombine.high %v1895_v51, %v1895_v51 }
 0x227   : > { %v707_v58 = vpop.f32.mrf.mxu1 }
 0x229   : > { %v708_v60 = vpop.f32.mrf.mxu1 }
 0x22b   : > { %v860_v63 = vpop.f32.mrf.mxu1 }
 0x22c   : > { %1874 = vmatmul.mubr.msk.f32.vlgmr.msra.gmra.mxu0 %vm392_vm1, %v860_v63 }
 0x22d   : > { %997 = vmatpush1.bf16.xpose.msra.mxu0 %v1879_v46  ;;  %v862_v0 = vpop.f32.mrf.mxu1  ;;  %1014 = vmatprep.mubr.bf16.mxu0 %v1878_v61 }
 0x22e   : > { %1152 = vmatprep.subr.bf16.mxu0 %v1135_v62 }
 0x22f   : > { %v863_v3 = vpop.f32.mrf.mxu1 }
 0x231   : > { %v864_v6 = vpop.f32.mrf.mxu1 }
 0x234   : > { %1015 = vmatmul.mubr.bf16.vlgmr.msra.gmra.mxu0 %v1877_v4 }
 0x235   : > { %1153 = vmatpush1.bf16.xpose.msra.mxu0 %v1887_v59  ;;  %1170 = vmatprep.mubr.bf16.mxu0 %v1886_v7  ;;  %v1891_v7 = vld [vmem:[%s2505_s17 + $0x30] sm:$0xff] }
 0x236   : > { %1896 = vmatprep.subr.msk.mxu0 %vm396_vm0, %v2533_v5 }
 0x23c   : > { %1171 = vmatmul.mubr.bf16.vlgmr.msra.gmra.mxu0 %v1885_v8 }
 0x23d   : > { %1897 = vmatpush1.msk.msra.mxu0 %vm396_vm0, %v2529_v2  ;;  %1401 = vmatprep.mubr.f32.mxu0 %v2275_v9 }
 0x23e   : > { %1904 = vmatprep.subr.msk.mxu0 %vm396_vm0, %v2533_v5 }
 0x2dc   : > { %v623_v10 = vpop.f32.mrf.mxu0 }
 0x2dd   : > { %v628_v12 = vmul.f32 %v623_v10, %v2561_v27  ;;  %v638_v13 = vmul.f32 %v623_v10, %v2563_v28  ;;  %v1903_v10 = vld.sshfl [vmem:[%s2513_s14 + $0x1c] sm:$0x33 pattern:$0x76325410] }
 0x2de   : > { %v625_v11 = vpop.f32.mrf.mxu0 }
 0x2df   : > { %v629_v14 = vmul.f32 %v625_v11, %v2563_v28  ;;  %v637_v15 = vmul.f32 %v625_v11, %v2561_v27 }
 0x2e1   : > { %v630_v16 = vsub.f32 %v628_v12, %v629_v14  ;;  %v639_v17 = vadd.f32 %v638_v13, %v637_v15  ;;  %v1894_v14 = vcombine.high %v1891_v7, %v1891_v7 }
 0x2e3   : > { %v631_v18 = vrot.slane %v630_v16, 4  ;;  %v640_v19 = vrot.slane %v639_v17, 4 }
 0x2e4   : > { %v779_v20 = vpop.f32.mrf.mxu0 }
 0x2e5   : > { %v632_v21 = vadd.f32 %v631_v18, %v630_v16  ;;  %v641_v22 = vadd.f32 %v640_v19, %v639_v17  ;;  %v784_v23 = vmul.f32 %v779_v20, %v2561_v27  ;;  %v794_v5 = vmul.f32 %v779_v20, %v2563_v28 }
 0x2e6   : > { %v781_v24 = vpop.f32.mrf.mxu0  ;;  %v1447_v17 = vcombine.high %v1903_v10, %v1903_v10 }
 0x2e7   : > { %v633_v25 = vrot.slane %v632_v21, 2  ;;  %v642_v26 = vrot.slane %v641_v22, 2  ;;  %v785_v29 = vmul.f32 %v781_v24, %v2563_v28  ;;  %v793_v30 = vmul.f32 %v781_v24, %v2561_v27 }
 0x2e9   : > { %v634_v31 = vadd.f32 %v633_v25, %v632_v21  ;;  %v643_v32 = vadd.f32 %v642_v26, %v641_v22  ;;  %v786_v33 = vsub.f32 %v784_v23, %v785_v29  ;;  %v795_v34 = vadd.f32 %v794_v5, %v793_v30  ;;  %v1899_v22 = vld [vmem:[%s2505_s17 + $0x38] sm:$0xff] }
 0x2ea   : > { %v1893_v5 = vcombine.low %v1891_v7, %v1891_v7  ;;  %v1902_v25 = vcombine.high %v1899_v22, %v1899_v22  ;;  %v1901_v26 = vcombine.low %v1899_v22, %v1899_v22  ;;  %v1613_v22 = vld [vmem:[#allocation11 + $0xd8] sm:$0xff] }
 0x2eb   : > { %v635_v35 = vrot.slane %v634_v31, 1  ;;  %v644_v36 = vrot.slane %v643_v32, 1  ;;  %v787_v37 = vrot.slane %v786_v33, 4  ;;  %v796_v38 = vrot.slane %v795_v34, 4 }
 0x2ec   : > { %v935_v39 = vpop.f32.mrf.mxu0 }
 0x2ed   : > { %v636_v40 = vadd.f32 %v635_v35, %v634_v31  ;;  %v645_v41 = vadd.f32 %v644_v36, %v643_v32  ;;  %v788_v42 = vadd.f32 %v787_v37, %v786_v33  ;;  %v797_v43 = vadd.f32 %v796_v38, %v795_v34 }
 0x2ee   : > { %v940_v44 = vmul.f32 %v935_v39, %v2561_v27  ;;  %v950_v45 = vmul.f32 %v935_v39, %v2563_v28  ;;  %v937_v46 = vpop.f32.mrf.mxu0 }
 0x2ef   : > { %646 = vst [vmem:[#allocation2 + $0x1] sm:$0x1] %v636_v40  ;;  %647 = vst [vmem:[#allocation2 + $0x9] sm:$0x1] %v645_v41  ;;  %v789_v47 = vrot.slane %v788_v42, 2  ;;  %v798_v48 = vrot.slane %v797_v43, 2  ;;  %v941_v49 = vmul.f32 %v937_v46, %v2563_v28  ;;  %v949_v50 = vmul.f32 %v937_v46, %v2561_v27 }
 0x2f1   : > { %v790_v52 = vadd.f32 %v789_v47, %v788_v42  ;;  %v799_v53 = vadd.f32 %v798_v48, %v797_v43  ;;  %v942_v54 = vsub.f32 %v940_v44, %v941_v49  ;;  %v951_v55 = vadd.f32 %v950_v45, %v949_v50 }
 0x2f3   : > { %v791_v57 = vrot.slane %v790_v52, 1  ;;  %v800_v58 = vrot.slane %v799_v53, 1  ;;  %v943_v59 = vrot.slane %v942_v54, 4  ;;  %v952_v60 = vrot.slane %v951_v55, 4 }
 0x2f4   : > { %v1016_v61 = vpop.f32.mrf.mxu0 }
 0x2f5   : > { %v792_v62 = vadd.f32 %v791_v57, %v790_v52  ;;  %v801_v63 = vadd.f32 %v800_v58, %v799_v53  ;;  %v944_v0 = vadd.f32 %v943_v59, %v942_v54  ;;  %v953_v1 = vadd.f32 %v952_v60, %v951_v55  ;;  %1882 = vmatmul.mubr.msk.f32.vlgmr.msra.gmra.mxu1 %vm392_vm1, %v1016_v61 }
 0x2f6   : > { %v1018_v3 = vpop.f32.mrf.mxu0  ;;  %1889 = vmatpush1.msk.msra.mxu1 %vm396_vm0, %v2529_v2  ;;  %1245 = vmatprep.mubr.f32.mxu1 %v2275_v9 }
 0x2f7   : > { %802 = vst [vmem:[#allocation2 + $0x2] sm:$0x1] %v792_v62  ;;  %803 = vst [vmem:[#allocation2 + $0xa] sm:$0x1] %v801_v63  ;;  %v945_v4 = vrot.slane %v944_v0, 2  ;;  %v954_v6 = vrot.slane %v953_v1, 2  ;;  %1308 = vmatprep.subr.bf16.mxu1 %v1291_v56 }
 0x2f8   : > { %v1019_v8 = vpop.f32.mrf.mxu0 }
 0x2f9   : > { %v946_v11 = vadd.f32 %v945_v4, %v944_v0  ;;  %v955_v12 = vadd.f32 %v954_v6, %v953_v1 }
 0x2fa   : > { %v1020_v13 = vpop.f32.mrf.mxu0 }
 0x2fb   : > { %v947_v15 = vrot.slane %v946_v11, 1  ;;  %v956_v16 = vrot.slane %v955_v12, 1 }
 0x2fc   : > { %v1172_v18 = vpop.f32.mrf.mxu0 }
 0x2fd   : > { %v948_v19 = vadd.f32 %v947_v15, %v946_v11  ;;  %v957_v20 = vadd.f32 %v956_v16, %v955_v12  ;;  %1890 = vmatmul.mubr.msk.f32.vlgmr.msra.gmra.mxu1 %vm392_vm1, %v1172_v18  ;;  %v1601_v15 = vld [vmem:[#allocation11 + $0x78] sm:$0xff]  ;;  %v1616_v16 = vld [vmem:[#allocation11 + $0xf0] sm:$0xff]  ;;  %v1615_v18 = vld [vmem:[#allocation11 + $0xe8] sm:$0xff] }
 0x2fe   : > { %1309 = vmatpush1.bf16.xpose.msra.mxu1 %v1895_v51  ;;  %v1174_v21 = vpop.f32.mrf.mxu0  ;;  %1326 = vmatprep.mubr.bf16.mxu1 %v1894_v14  ;;  %v1617_v14 = vld [vmem:[#allocation11 + $0xf8] sm:$0xff] }
 0x2ff   : > { %958 = vst [vmem:[#allocation2 + $0x3] sm:$0x1] %v948_v19  ;;  %959 = vst [vmem:[#allocation2 + $0xb] sm:$0x1] %v957_v20  ;;  %1464 = vmatprep.subr.bf16.mxu1 %v1447_v17  ;;  %v1600_v17 = vld [vmem:[#allocation11 + $0x70] sm:$0xff]  ;;  %v1599_v19 = vld [vmem:[#allocation11 + $0x68] sm:$0xff] }
 0x300   : > { %v1175_v23 = vpop.f32.mrf.mxu0  ;;  %v1614_v20 = vld [vmem:[#allocation11 + $0xe0] sm:$0xff] }
 0x301   : > { %v1598_v21 = vld [vmem:[#allocation11 + $0x60] sm:$0xff]  ;;  %v1597_v23 = vld [vmem:[#allocation11 + $0x58] sm:$0xff] }
 0x302   : > { %v1176_v24 = vpop.f32.mrf.mxu0 }
 0x303   : > { %v1596_v24 = vld [vmem:[#allocation11 + $0x50] sm:$0xff] }
 0x305   : > { %1327 = vmatmul.mubr.bf16.vlgmr.msra.gmra.mxu1 %v1893_v5  ;;  %v1612_v5 = vld [vmem:[#allocation11 + $0xd0] sm:$0xff] }
 0x306   : > { %1465 = vmatpush1.bf16.xpose.msra.mxu1 %v1903_v10  ;;  %1482 = vmatprep.mubr.bf16.mxu1 %v1902_v25  ;;  %v1611_v25 = vld [vmem:[#allocation11 + $0xc8] sm:$0xff] }
 0x30d   : > { %1483 = vmatmul.mubr.bf16.vlgmr.msra.gmra.mxu1 %v1901_v26  ;;  %v1595_v26 = vld [vmem:[#allocation11 + $0x48] sm:$0xff] }
 0x3b5   : > { %v1091_v29 = vpop.f32.mrf.mxu1 }
 0x3b6   : > { %v1096_v31 = vmul.f32 %v1091_v29, %v2561_v27  ;;  %v1106_v32 = vmul.f32 %v1091_v29, %v2563_v28  ;;  %v1610_v29 = vld [vmem:[#allocation11 + $0xc0] sm:$0xff] }
 0x3b7   : > { %v1093_v30 = vpop.f32.mrf.mxu1 }
 0x3b8   : > { %v1097_v33 = vmul.f32 %v1093_v30, %v2563_v28  ;;  %v1105_v34 = vmul.f32 %v1093_v30, %v2561_v27  ;;  %v1594_v30 = vld [vmem:[#allocation11 + $0x40] sm:$0xff] }
 0x3ba   : > { %v1098_v35 = vsub.f32 %v1096_v31, %v1097_v33  ;;  %v1107_v36 = vadd.f32 %v1106_v32, %v1105_v34  ;;  %v1609_v31 = vld [vmem:[#allocation11 + $0xb8] sm:$0xff]  ;;  %v1608_v33 = vld [vmem:[#allocation11 + $0xb0] sm:$0xff] }
 0x3bb   : > { %v1593_v32 = vld [vmem:[#allocation11 + $0x38] sm:$0xff]  ;;  %v1592_v34 = vld [vmem:[#allocation11 + $0x30] sm:$0xff] }
 0x3bc   : > { %v1099_v37 = vrot.slane %v1098_v35, 4  ;;  %v1108_v38 = vrot.slane %v1107_v36, 4 }
 0x3bd   : > { %v1247_v39 = vpop.f32.mrf.mxu1 }
 0x3be   : > { %v1100_v40 = vadd.f32 %v1099_v37, %v1098_v35  ;;  %v1109_v41 = vadd.f32 %v1108_v38, %v1107_v36  ;;  %v1252_v42 = vmul.f32 %v1247_v39, %v2561_v27  ;;  %v1262_v43 = vmul.f32 %v1247_v39, %v2563_v28  ;;  %v1607_v35 = vld [vmem:[#allocation11 + $0xa8] sm:$0xff]  ;;  %v1606_v37 = vld [vmem:[#allocation11 + $0xa0] sm:$0xff]  ;;  %v1605_v39 = vld [vmem:[#allocation11 + $0x98] sm:$0xff] }
 0x3bf   : > { %v1249_v44 = vpop.f32.mrf.mxu1  ;;  %v1591_v36 = vld [vmem:[#allocation11 + $0x28] sm:$0xff]  ;;  %v1590_v38 = vld [vmem:[#allocation11 + $0x20] sm:$0xff] }
 0x3c0   : > { %v1101_v45 = vrot.slane %v1100_v40, 2  ;;  %v1110_v46 = vrot.slane %v1109_v41, 2  ;;  %v1253_v47 = vmul.f32 %v1249_v44, %v2563_v28  ;;  %v1261_v48 = vmul.f32 %v1249_v44, %v2561_v27  ;;  %v1587_v44 = vld [vmem:[#allocation11 + $0x8] sm:$0xff] }
 0x3c2   : > { %v1102_v49 = vadd.f32 %v1101_v45, %v1100_v40  ;;  %v1111_v50 = vadd.f32 %v1110_v46, %v1109_v41  ;;  %v1254_v51 = vsub.f32 %v1252_v42, %v1253_v47  ;;  %v1263_v52 = vadd.f32 %v1262_v43, %v1261_v48  ;;  %v1589_v40 = vld [vmem:[#allocation11 + $0x18] sm:$0xff]  ;;  %v1604_v41 = vld [vmem:[#allocation11 + $0x90] sm:$0xff]  ;;  %v1603_v43 = vld [vmem:[#allocation11 + $0x88] sm:$0xff] }
 0x3c3   : > { %v1588_v42 = vld [vmem:[#allocation11 + $0x10] sm:$0xff]  ;;  %v1602_v45 = vld [vmem:[#allocation11 + $0x80] sm:$0xff] }
 0x3c4   : > { %v1103_v53 = vrot.slane %v1102_v49, 1  ;;  %v1112_v54 = vrot.slane %v1111_v50, 1  ;;  %v1255_v55 = vrot.slane %v1254_v51, 4  ;;  %v1264_v56 = vrot.slane %v1263_v52, 4  ;;  %v1586_v46 = vld [vmem:[#allocation11] sm:$0xff] }
 0x3c5   : > { %v1328_v57 = vpop.f32.mrf.mxu1 }
 0x3c6   : > { %v1104_v58 = vadd.f32 %v1103_v53, %v1102_v49  ;;  %v1113_v59 = vadd.f32 %v1112_v54, %v1111_v50  ;;  %v1256_v60 = vadd.f32 %v1255_v55, %v1254_v51  ;;  %v1265_v61 = vadd.f32 %v1264_v56, %v1263_v52  ;;  %1898 = vmatmul.mubr.msk.f32.vlgmr.msra.gmra.mxu0 %vm392_vm1, %v1328_v57 }
 0x3c7   : > { %v1330_v62 = vpop.f32.mrf.mxu1  ;;  %1905 = vmatpush1.msk.msra.mxu0 %vm396_vm0, %v2529_v2  ;;  %1557 = vmatprep.mubr.f32.mxu0 %v2275_v9 }
 0x3c8   : > { %1114 = vst [vmem:[#allocation2 + $0x4] sm:$0x1] %v1104_v58  ;;  %1115 = vst [vmem:[#allocation2 + $0xc] sm:$0x1] %v1113_v59  ;;  %v1257_v63 = vrot.slane %v1256_v60, 2  ;;  %v1266_v0 = vrot.slane %v1265_v61, 2  ;;  %1915 = vmatprep.subr.mxu0 %v1617_v14 }
 0x3c9   : > { %v1331_v1 = vpop.f32.mrf.mxu1 }
 0x3ca   : > { %v1258_v3 = vadd.f32 %v1257_v63, %v1256_v60  ;;  %v1267_v4 = vadd.f32 %v1266_v0, %v1265_v61 }
 0x3cb   : > { %v1332_v6 = vpop.f32.mrf.mxu1 }
 0x3cc   : > { %v1259_v7 = vrot.slane %v1258_v3, 1  ;;  %v1268_v8 = vrot.slane %v1267_v4, 1 }
 0x3cd   : > { %v1484_v10 = vpop.f32.mrf.mxu1 }
 0x3ce   : > { %v1260_v11 = vadd.f32 %v1259_v7, %v1258_v3  ;;  %v1269_v12 = vadd.f32 %v1268_v8, %v1267_v4  ;;  %1906 = vmatmul.mubr.msk.f32.vlgmr.msra.gmra.mxu0 %vm392_vm1, %v1484_v10 }
 0x3cf   : > { %v1486_v13 = vpop.f32.mrf.mxu1  ;;  %1916 = vmatpush3.msra.mxu0 %v1601_v15 }
 0x3d0   : > { %1270 = vst [vmem:[#allocation2 + $0x5] sm:$0x1] %v1260_v11  ;;  %1271 = vst [vmem:[#allocation2 + $0xd] sm:$0x1] %v1269_v12  ;;  %1917 = vmatprep.subr.mxu0 %v1616_v16 }
 0x3d1   : > { %v1487_v2 = vpop.f32.mrf.mxu1  ;;  %1918 = vmatpush3.msra.mxu0 %v1600_v17 }
 0x3d2   : > { %1919 = vmatprep.subr.mxu0 %v1615_v18 }
 0x3d3   : > { %v1488_v9 = vpop.f32.mrf.mxu1  ;;  %1920 = vmatpush3.msra.mxu0 %v1599_v19 }
 0x3d4   : > { %1921 = vmatprep.subr.mxu0 %v1614_v20 }
 0x3d5   : > { %1922 = vmatpush3.msra.mxu0 %v1598_v21 }
 0x3d6   : > { %1923 = vmatprep.subr.mxu0 %v1613_v22 }
 0x3d7   : > { %1924 = vmatpush3.msra.mxu0 %v1597_v23 }
 0x3d8   : > { %1925 = vmatprep.subr.mxu0 %v1612_v5 }
 0x3d9   : > { %1926 = vmatpush3.msra.mxu0 %v1596_v24 }
 0x3da   : > { %1927 = vmatprep.subr.mxu0 %v1611_v25 }
 0x3db   : > { %1928 = vmatpush3.msra.mxu0 %v1595_v26 }
 0x3dc   : > { %1929 = vmatprep.subr.mxu0 %v1610_v29 }
 0x3dd   : > { %1930 = vmatpush3.msra.mxu0 %v1594_v30 }
 0x3de   : > { %1931 = vmatprep.subr.mxu0 %v1609_v31 }
 0x3df   : > { %1932 = vmatpush3.msra.mxu0 %v1593_v32 }
 0x3e0   : > { %1933 = vmatprep.subr.mxu0 %v1608_v33 }
 0x3e1   : > { %1934 = vmatpush3.msra.mxu0 %v1592_v34 }
 0x3e2   : > { %1935 = vmatprep.subr.mxu0 %v1607_v35 }
 0x3e3   : > { %1936 = vmatpush3.msra.mxu0 %v1591_v36 }
 0x3e4   : > { %1937 = vmatprep.subr.mxu0 %v1606_v37 }
 0x3e5   : > { %1938 = vmatpush3.msra.mxu0 %v1590_v38 }
 0x3e6   : > { %1939 = vmatprep.subr.mxu0 %v1605_v39 }
 0x3e7   : > { %1940 = vmatpush3.msra.mxu0 %v1589_v40 }
 0x3e8   : > { %1941 = vmatprep.subr.mxu0 %v1604_v41 }
 0x3e9   : > { %1942 = vmatpush3.msra.mxu0 %v1588_v42 }
 0x3ea   : > { %1943 = vmatprep.subr.mxu0 %v1603_v43 }
 0x3eb   : > { %1944 = vmatpush3.msra.mxu0 %v1587_v44 }
 0x3ec   : > { %1945 = vmatprep.subr.mxu0 %v1602_v45 }
 0x3ed   : > { %1946 = vmatpush3.msra.mxu0 %v1586_v46 }
 0x486   : > { %v1403_v47 = vpop.f32.mrf.mxu0 }
 0x487   : > { %v1408_v49 = vmul.f32 %v1403_v47, %v2561_v27  ;;  %v1418_v50 = vmul.f32 %v1403_v47, %v2563_v28 }
 0x488   : > { %v1405_v48 = vpop.f32.mrf.mxu0 }
 0x489   : > { %v1409_v51 = vmul.f32 %v1405_v48, %v2563_v28  ;;  %v1417_v52 = vmul.f32 %v1405_v48, %v2561_v27 }
 0x48b   : > { %v1410_v53 = vsub.f32 %v1408_v49, %v1409_v51  ;;  %v1419_v54 = vadd.f32 %v1418_v50, %v1417_v52 }
 0x48d   : > { %v1411_v55 = vrot.slane %v1410_v53, 4  ;;  %v1420_v56 = vrot.slane %v1419_v54, 4 }
 0x48e   : > { %v1559_v57 = vpop.f32.mrf.mxu0 }
 0x48f   : > { %v1412_v58 = vadd.f32 %v1411_v55, %v1410_v53  ;;  %v1421_v59 = vadd.f32 %v1420_v56, %v1419_v54  ;;  %v1564_v60 = vmul.f32 %v1559_v57, %v2561_v27  ;;  %v1574_v61 = vmul.f32 %v1559_v57, %v2563_v28 }
 0x490   : > { %v1561_v62 = vpop.f32.mrf.mxu0 }
 0x491   : > { %v1413_v63 = vrot.slane %v1412_v58, 2  ;;  %v1422_v0 = vrot.slane %v1421_v59, 2  ;;  %v1565_v1 = vmul.f32 %v1561_v62, %v2563_v28  ;;  %v1573_v3 = vmul.f32 %v1561_v62, %v2561_v27 }
 0x493   : > { %v1414_v4 = vadd.f32 %v1413_v63, %v1412_v58  ;;  %v1423_v6 = vadd.f32 %v1422_v0, %v1421_v59  ;;  %v1566_v7 = vsub.f32 %v1564_v60, %v1565_v1  ;;  %v1575_v8 = vadd.f32 %v1574_v61, %v1573_v3 }
 0x495   : > { %v1415_v10 = vrot.slane %v1414_v4, 1  ;;  %v1424_v11 = vrot.slane %v1423_v6, 1  ;;  %v1567_v12 = vrot.slane %v1566_v7, 4  ;;  %v1576_v13 = vrot.slane %v1575_v8, 4 }
 0x497   : > { %v1416_v2 = vadd.f32 %v1415_v10, %v1414_v4  ;;  %v1425_v9 = vadd.f32 %v1424_v11, %v1423_v6  ;;  %v1568_v14 = vadd.f32 %v1567_v12, %v1566_v7  ;;  %v1577_v15 = vadd.f32 %v1576_v13, %v1575_v8 }
 0x499   : > { %1426 = vst [vmem:[#allocation2 + $0x6] sm:$0x1] %v1416_v2  ;;  %1427 = vst [vmem:[#allocation2 + $0xe] sm:$0x1] %v1425_v9  ;;  %v1569_v16 = vrot.slane %v1568_v14, 2  ;;  %v1578_v28 = vrot.slane %v1577_v15, 2 }
 0x49b   : > { %v1570_v17 = vadd.f32 %v1569_v16, %v1568_v14  ;;  %v1579_v27 = vadd.f32 %v1578_v28, %v1577_v15 }
 0x49d   : > { %v1571_v18 = vrot.slane %v1570_v17, 1  ;;  %v1580_v19 = vrot.slane %v1579_v27, 1 }
 0x49f   : > { %v1572_v20 = vadd.f32 %v1571_v18, %v1570_v17  ;;  %v1581_v21 = vadd.f32 %v1580_v19, %v1579_v27 }
 0x4a1   : > { %1582 = vst [vmem:[#allocation2 + $0x7] sm:$0x1] %v1572_v20  ;;  %1583 = vst [vmem:[#allocation2 + $0xf] sm:$0x1] %v1581_v21 }
 0x4a8   : > { %v1585_v22 = vld [vmem:[#allocation2 + $0x8] sm:$0xff]  ;;  %v1584_v23 = vld [vmem:[#allocation2] sm:$0xff] }
 0x4a9   : > { %1682 = vmatprep.mubr.f32.mxu0 %v1585_v22 }
 0x4aa   : > { %1683 = vmatmul.mubr.f32.vlgmr.msra.gmra.mxu0 %v1584_v23 }
 0x56a   : > { %v1947_v5 = vpop.f32.mrf.mxu0 }
 0x56c   : > { %v1948_v24 = vpop.f32.mrf.mxu0 }
 0x56d   : > { %v1949_v25 = vadd.f32 %v1948_v24, %v1947_v5 }
 0x56f   : > { %1688 = vst [vmem:[%s323_s9] sm:$0xff] %v1949_v25 }
 0x570   : > { %2201 = shalt.err (!%p2198_p5)
}
 0x571   : > { %s2202_s8 = scalar_lea.hbm %s1701_s30, 128  ;;  %s2206_s17 = scalar_lea.hbm %s2674_s5, 256 }
 0x572   : > { %p2203_p2 = scmp.ne.s32.totalorder %s1701_s30, %s2202_s8  ;;  %p2207_p7 = scmp.lt.s32.totalorder %s1701_s30, %s2674_s5 }
 0x573   : > { %p2208_p10 = scmp.lt.s32.totalorder %s2206_s17, %s2202_s8 }
 0x574   : > { %p2204_p12 = pnand %p2203_p2, %p2411_p9 }
 0x575   : > { %p2209_p13 = por %p2208_p10, %p2207_p7 }
 0x576   : > { %p2205_p11 = pneg %p2204_p12 }
 0x578   : > { %p2210_p0 = pnand %p2209_p13, %p2205_p11 }
 0x57a   : > { %2213 = shalt.err (!%p2210_p0)
}
 0x57b   : > { %1966 = dma.vmem_to_hbm [thread:$0]  (%p2411_p9), %s1704_s13, 128, %s1701_s30, %s1690_s11  }
 0x57c PF: > { %s1715_s23 = sand.u32 1, %s2252_s18   ;;  %p2699_p1 = scmp.ne.s32.totalorder %s2682_s25, 0 }
 0x57d   : > { %p2700_p3 = scmp.ge.s32.totalorder %s2264_s21, 2  ;;  %s1716_s14 = scalar_lea.sflag [#allocation5], %s1715_s23 }
 0x57f   : > { %p1986_p6 = pnand %p2700_p3, %p2699_p1 }
 0x581   : > { %p1987_p4 = pneg %p1986_p6 }
 0x583   : > { %2247 = dma.done.wait (%p1987_p4), %s1716_s14, 128  }
 0x584   : > { %2249 = vsyncadd (%p1987_p4), %s1716_s14, 4294967168  ;;  %p22_p8 = scmp.ge.s32.totalorder %s2397_s28, 4   ;;  %s2701_s18 = smov %s2256_s19 }
 0x585   : > { %s2702_s19 = smov %s2260_s20  ;;  %s2703_s20 = smov %s2407_s7 }
 0x586   : > { %s2704_s21 = smov %s2397_s28  ;;  %24 = sbr.rel (!%p22_p8) target bundleno = 12 (0xc), region = 124 }
 0x58b   :  { %1721 = vsyncpa [#allocation4], 1 }
 0x58c   :  { %1723 = vsyncpa [#allocation4 + $0x1], 1 }
 0x58d   :  { %1724 = vsyncpa [#allocation7], 1 }
 0x58e   :  { %1726 = vsyncpa [#allocation7 + $0x1], 1 }
 0x58f   :  { %1727 = vsyncpa [#allocation10], 1 }
 0x590   :  { %1728 = vsyncpa [#allocation5], 1 }
 0x591   :  { %1730 = vsyncpa [#allocation5 + $0x1], 1 }

</bundles_post_ra>
